<compile_context>
chip_gen: v6e
topology: v6e:2x2x1
jax: 0.10.0
libtpu: 0.0.40
codegen_flags: <defaults>
</compile_context>

<pallas_src>
import functools
import math

import jax
import jax.numpy as jnp
from jax import lax
from jax.experimental import pallas as pl
from jax.experimental.pallas import tpu as pltpu

LN_EPS = 1e-5


def _layer_norm(x, w, b):
    # x: (T, E) f32, w/b: (E,) f32
    mu = jnp.mean(x, axis=-1, keepdims=True)
    var = jnp.mean((x - mu) ** 2, axis=-1, keepdims=True)
    return (x - mu) * lax.rsqrt(var + LN_EPS) * w + b


def _gelu_exact(x):
    # PyTorch nn.GELU() default: exact erf formulation (kept in f32 for v5e parity).
    return 0.5 * x * (1.0 + lax.erf(x * (1.0 / math.sqrt(2.0))))


def encoder_block_kernel(
    x_ref,          # (1, S, E)  full sequence row; index constant over st -> one DMA per b
    vecE_ref,       # (6, E) f32 pack: [ln1_w, ln1_b, ln2_w, ln2_b, b_out, b_fc2]
    bqkv_ref,       # (1, 3E) f32 fused in-proj bias [bq | bk | bv]
    b1_ref,         # (1, H) f32
    wqkv_ref,       # (E, 3E) bf16 fused in-proj weight [Wq | Wk | Wv] (pre-transposed)
    wout_ref,       # (E, E)  bf16
    w1_ref,         # (E, H)  bf16
    w2_ref,         # (H, E)  bf16
    o_ref,          # (1, Tq, E) output tile
    qkv_ref,        # VMEM scratch (S, 3E) bf16: cached [q*scale | k | v] for this row
    *, num_heads,
):
    cd = wqkv_ref.dtype                          # matmul compute dtype (bf16)
    st = pl.program_id(1)
    S, E3 = qkv_ref.shape
    E = E3 // 3
    Tq = o_ref.shape[1]
    dh = E // num_heads
    scale = 1.0 / math.sqrt(dh)

    ln1_w, ln1_b = vecE_ref[0], vecE_ref[1]
    ln2_w, ln2_b = vecE_ref[2], vecE_ref[3]
    b_out, b_fc2 = vecE_ref[4], vecE_ref[5]

    # ---- once per batch row: LN1 + fused QKV projection, cached in VMEM ----
    @pl.when(st == 0)
    def _():
        x_f = x_ref[0].astype(jnp.float32)                                    # (S, E)
        xn_f = _layer_norm(x_f, ln1_w, ln1_b)
        qkv = jnp.dot(xn_f.astype(cd), wqkv_ref[...],
                      preferred_element_type=jnp.float32) + bqkv_ref[0]       # (S, 3E) f32
        # fold the 1/sqrt(dh) score scale into q (in f32) before caching in bf16
        qkv_ref[:, 0:E] = (qkv[:, 0:E] * scale).astype(cd)
        qkv_ref[:, E:3 * E] = qkv[:, E:3 * E].astype(cd)

    # ---- per query tile ----
    q0 = pl.multiple_of(st * Tq, Tq)
    x_t = x_ref[0, pl.ds(q0, Tq), :].astype(jnp.float32)                      # (Tq, E) residual
    q_t = qkv_ref[pl.ds(q0, Tq), 0:E]                                         # (Tq, E) bf16 (scaled)
    k_f = qkv_ref[:, E:2 * E]                                                 # (S, E)  bf16
    v_f = qkv_ref[:, 2 * E:3 * E]                                             # (S, E)  bf16

    ctxs = []
    for h in range(num_heads):                    # static unroll (nh is small)
        sl = slice(h * dh, (h + 1) * dh)
        # scores: contract last dims of q and k (no materialized transpose)
        s = lax.dot_general(q_t[:, sl], k_f[:, sl],
                            (((1,), (1,)), ((), ())),
                            preferred_element_type=jnp.float32)               # (Tq, S) f32
        s = s - jnp.max(s, axis=-1, keepdims=True)
        p = jnp.exp(s)
        p = p * pl.reciprocal(jnp.sum(p, axis=-1, keepdims=True), approx=True)
        ctxs.append(jnp.dot(p.astype(cd), v_f[:, sl],
                            preferred_element_type=jnp.float32))              # (Tq, dh)
    # merge heads once -> single K=E out-projection (full MXU contraction depth)
    ctx = jnp.concatenate(ctxs, axis=-1).astype(cd)                           # (Tq, E) bf16
    attn = jnp.dot(ctx, wout_ref[...], preferred_element_type=jnp.float32) + b_out
    x1 = attn + x_t                                                           # residual 1 (f32)

    # ---- MLP block (pre-LN) ----
    yn = _layer_norm(x1, ln2_w, ln2_b)
    h1 = jnp.dot(yn.astype(cd), w1_ref[...],
                 preferred_element_type=jnp.float32) + b1_ref[0]
    h1 = _gelu_exact(h1)                                                      # exact erf == nn.GELU()
    h2 = jnp.dot(h1.astype(cd), w2_ref[...],
                 preferred_element_type=jnp.float32) + b_fc2

    o_ref[0] = (h2 + x1).astype(o_ref.dtype)                                  # residual 2


def _vmem_limit_bytes(S, E, H, tile_s):
    """Generation-aware VMEM budget with headroom below physical capacity."""
    try:
        phys = int(pltpu.get_tpu_info().vmem_capacity_bytes)
    except Exception:
        phys = 64 << 20                               # conservative (v7x per-TC VMEM)
    cap = int(phys * 0.85)                            # leave room for compiler scratch/sems
    weights = 2 * (3 * E * E + E * E + 2 * E * H) * 2     # bf16 weight blocks, double-buffered
    small = 2 * (6 * E + 3 * E + H) * 4                    # packed vectors (f32)
    blocks = 2 * (S * E + tile_s * E) * 4                  # x row + out tile, double-buffered
    cache = S * 3 * E * 2                                   # qkv scratch (bf16)
    work = 4 * (S * 3 * E + tile_s * (6 * E + 2 * H) + 2 * tile_s * S)  # f32 temporaries
    est = int(1.5 * (weights + small + blocks + cache + work)) + (4 << 20)
    return max(16 << 20, min(est, cap))


def transformer_encoder_block(x, params, num_heads, *, tile_s=None):
    B, S, E = x.shape
    H = params["w1t"].shape[1]
    assert E % num_heads == 0

    if tile_s is None:
        # Keep the MXU M-dim large: whole sequence for ViT-sized S, else >=128 tiles.
        tile_s = S
        for cand in (256, 128):
            if S > cand and S % cand == 0:
                tile_s = cand
                break
    assert S % tile_s == 0 and (tile_s == S or tile_s % 8 == 0)

    cd = params["wq_t"].dtype
    # Fused QKV weight/bias and a single pack for the small E-wide vectors
    # (fewer tiny double-buffered blocks / DMA descriptors).
    wqkv = jnp.concatenate([params["wq_t"], params["wk_t"], params["wv_t"]], axis=1).astype(cd)
    bqkv = jnp.concatenate([params["bq"], params["bk"], params["bv"]], axis=1).astype(jnp.float32)
    vecE = jnp.concatenate([params["ln1_w"], params["ln1_b"],
                            params["ln2_w"], params["ln2_b"],
                            params["bout"], params["b2"]], axis=0).astype(jnp.float32)

    def const(shape):
        return pl.BlockSpec(shape, lambda b, st, _n=len(shape): (0,) * _n)

    grid_spec = pltpu.PrefetchScalarGridSpec(
        num_scalar_prefetch=0,
        grid=(B, S // tile_s),
        in_specs=[
            pl.BlockSpec((1, S, E), lambda b, st: (b, 0, 0)),   # full row (DMA'd once per b)
            const((6, E)),                                       # packed LN / bias vectors
            const((1, 3 * E)),                                   # fused QKV bias
            const((1, H)),                                       # fc1 bias
            const((E, 3 * E)),                                   # fused QKV weight
            const((E, E)),                                       # out-proj weight
            const((E, H)),                                       # fc1 weight
            const((H, E)),                                       # fc2 weight
        ],
        out_specs=pl.BlockSpec((1, tile_s, E), lambda b, st: (b, st, 0)),
        scratch_shapes=[pltpu.VMEM((S, 3 * E), cd)],             # per-row QKV cache
    )

    kernel = functools.partial(encoder_block_kernel, num_heads=num_heads)

    return pl.pallas_call(
        kernel,
        out_shape=jax.ShapeDtypeStruct((B, S, E), x.dtype),
        grid_spec=grid_spec,
        compiler_params=pltpu.CompilerParams(
            # B parallel (v7x megacore shards rows); sequence-tile axis sequential so
            # the QKV cache written at st==0 is valid for all later tiles of the row.
            dimension_semantics=("parallel", "arbitrary"),
            vmem_limit_bytes=_vmem_limit_bytes(S, E, H, tile_s),
        ),
    )(x, vecE, bqkv, params["b1"], wqkv, params["wout_t"], params["w1t"], params["w2t"])


def reference_block(x, params, num_heads):
    """Pure-JAX f32 reference replicating the PyTorch forward (eval mode)."""
    B, S, E = x.shape
    dh = E // num_heads
    f32 = lambda a: a.astype(jnp.float32)

    def ln(v, w, b):
        mu = jnp.mean(v, -1, keepdims=True)
        var = jnp.mean((v - mu) ** 2, -1, keepdims=True)
        return (v - mu) / jnp.sqrt(var + LN_EPS) * w[0] + b[0]

    xn = ln(x, params["ln1_w"], params["ln1_b"])
    q = xn @ f32(params["wq_t"]) + params["bq"][0]
    k = xn @ f32(params["wk_t"]) + params["bk"][0]
    v = xn @ f32(params["wv_t"]) + params["bv"][0]

    def heads(t):  # (B,S,E) -> (B, nh, S, dh)
        return t.reshape(B, S, num_heads, dh).transpose(0, 2, 1, 3)

    qh, kh, vh = heads(q), heads(k), heads(v)
    s = jnp.einsum("bhqd,bhkd->bhqk", qh, kh) / math.sqrt(dh)
    p = jax.nn.softmax(s, axis=-1)
    o = jnp.einsum("bhqk,bhkd->bhqd", p, vh).transpose(0, 2, 1, 3).reshape(B, S, E)
    attn = o @ f32(params["wout_t"]) + params["bout"][0]
    x1 = attn + x

    yn = ln(x1, params["ln2_w"], params["ln2_b"])
    h1 = yn @ f32(params["w1t"]) + params["b1"][0]
    h1 = 0.5 * h1 * (1.0 + lax.erf(h1 / math.sqrt(2.0)))
    h2 = h1 @ f32(params["w2t"]) + params["b2"][0]
    return h2 + x1


def init_params(key, E, H, wdtype=jnp.bfloat16):
    ks = jax.random.split(key, 12)
    sc = 0.02
    w = lambda k, shape: (sc * jax.random.normal(k, shape, jnp.float32)).astype(wdtype)
    b = lambda k, shape: sc * jax.random.normal(k, shape, jnp.float32)
    return {
        "ln1_w": jnp.ones((1, E), jnp.float32),
        "ln1_b": jnp.zeros((1, E), jnp.float32),
        "wq_t": w(ks[0], (E, E)), "wk_t": w(ks[1], (E, E)), "wv_t": w(ks[2], (E, E)),
        "bq": b(ks[3], (1, E)), "bk": b(ks[4], (1, E)), "bv": b(ks[5], (1, E)),
        "wout_t": w(ks[6], (E, E)), "bout": b(ks[7], (1, E)),
        "ln2_w": jnp.ones((1, E), jnp.float32),
        "ln2_b": jnp.zeros((1, E), jnp.float32),
        "w1t": w(ks[8], (E, H)), "b1": b(ks[9], (1, H)),
        "w2t": w(ks[10], (H, E)), "b2": b(ks[11], (1, E)),
    }


if __name__ == "__main__":
    # Small, lane-dense demo config: E and H multiples of 128, S / tile_s multiples of 8.
    B, S, E, H, NUM_HEADS = 2, 16, 128, 256, 4

    key = jax.random.PRNGKey(0)
    kx, kp = jax.random.split(key)
    x = jax.random.normal(kx, (B, S, E), jnp.float32)
    params = init_params(kp, E, H)

    ref = reference_block(x, params, NUM_HEADS)

    # Tiled path: grid = (B, 2) -> exercises the st-axis QKV cache (written at st==0,
    # reused at st==1).  Real configs would use tile_s >= 128.
    out_tiled = jax.block_until_ready(
        transformer_encoder_block(x, params, NUM_HEADS, tile_s=8))
    # Default path: tile_s == S (single sequence step per batch row).
    out_full = jax.block_until_ready(
        transformer_encoder_block(x, params, NUM_HEADS))

    for name, out in (("tiled", out_tiled), ("full", out_full)):
        max_err = jnp.max(jnp.abs(out - ref))
        if not jnp.allclose(out, ref, atol=2e-2, rtol=2e-2):
            raise AssertionError(
                f"Pallas kernel ({name}) mismatch vs reference (max abs err = {max_err})")
    print("KERNEL_OK")
</pallas_src>

<mosaic_0001>
module attributes {stable_mosaic.version = 11 : i64} {
  func.func @encoder_block_kernel(%arg0: i32, %arg1: i32, %arg2: memref<1x16x128xf32, #tpu.memory_space<vmem>>, %arg3: memref<6x128xf32, #tpu.memory_space<vmem>>, %arg4: memref<1x384xf32, #tpu.memory_space<vmem>>, %arg5: memref<1x256xf32, #tpu.memory_space<vmem>>, %arg6: memref<128x384xbf16, #tpu.memory_space<vmem>>, %arg7: memref<128x128xbf16, #tpu.memory_space<vmem>>, %arg8: memref<128x256xbf16, #tpu.memory_space<vmem>>, %arg9: memref<256x128xbf16, #tpu.memory_space<vmem>>, %arg10: memref<1x8x128xf32, #tpu.memory_space<vmem>>, %arg11: memref<16x384xbf16, #tpu.memory_space<vmem>>) attributes {dimension_semantics = [#tpu.dimension_semantics<parallel>, #tpu.dimension_semantics<arbitrary>], iteration_bounds = array<i64: 2, 2>, scalar_prefetch = 0 : i64, scratch_operands = 1 : i64, tpu.core_type = #tpu.core_type<tc>, window_params = [{transform_indices = @transform_0, window_bounds = array<i64: 1, 16, 128>}, {pipeline_mode = #tpu.pipeline_mode<synchronous>, transform_indices = @transform_1, window_bounds = array<i64: 6, 128>}, {pipeline_mode = #tpu.pipeline_mode<synchronous>, transform_indices = @transform_2, window_bounds = array<i64: 1, 384>}, {pipeline_mode = #tpu.pipeline_mode<synchronous>, transform_indices = @transform_3, window_bounds = array<i64: 1, 256>}, {pipeline_mode = #tpu.pipeline_mode<synchronous>, transform_indices = @transform_4, window_bounds = array<i64: 128, 384>}, {pipeline_mode = #tpu.pipeline_mode<synchronous>, transform_indices = @transform_5, window_bounds = array<i64: 128, 128>}, {pipeline_mode = #tpu.pipeline_mode<synchronous>, transform_indices = @transform_6, window_bounds = array<i64: 128, 256>}, {pipeline_mode = #tpu.pipeline_mode<synchronous>, transform_indices = @transform_7, window_bounds = array<i64: 256, 128>}, {transform_indices = @transform_8, window_bounds = array<i64: 1, 8, 128>}]} {
    %c0 = arith.constant 0 : index
    %c0_0 = arith.constant 0 : index
    %0 = vector.load %arg3[%c0, %c0_0] : memref<6x128xf32, #tpu.memory_space<vmem>>, vector<1x128xf32>
    %1 = vector.shape_cast %0 : vector<1x128xf32> to vector<128xf32>
    %c1 = arith.constant 1 : index
    %c0_1 = arith.constant 0 : index
    %2 = vector.load %arg3[%c1, %c0_1] : memref<6x128xf32, #tpu.memory_space<vmem>>, vector<1x128xf32>
    %3 = vector.shape_cast %2 : vector<1x128xf32> to vector<128xf32>
    %c2 = arith.constant 2 : index
    %c0_2 = arith.constant 0 : index
    %4 = vector.load %arg3[%c2, %c0_2] : memref<6x128xf32, #tpu.memory_space<vmem>>, vector<1x128xf32>
    %5 = vector.shape_cast %4 : vector<1x128xf32> to vector<128xf32>
    %c3 = arith.constant 3 : index
    %c0_3 = arith.constant 0 : index
    %6 = vector.load %arg3[%c3, %c0_3] : memref<6x128xf32, #tpu.memory_space<vmem>>, vector<1x128xf32>
    %7 = vector.shape_cast %6 : vector<1x128xf32> to vector<128xf32>
    %c4 = arith.constant 4 : index
    %c0_4 = arith.constant 0 : index
    %8 = vector.load %arg3[%c4, %c0_4] : memref<6x128xf32, #tpu.memory_space<vmem>>, vector<1x128xf32>
    %9 = vector.shape_cast %8 : vector<1x128xf32> to vector<128xf32>
    %c5 = arith.constant 5 : index
    %c0_5 = arith.constant 0 : index
    %10 = vector.load %arg3[%c5, %c0_5] : memref<6x128xf32, #tpu.memory_space<vmem>>, vector<1x128xf32>
    %11 = vector.shape_cast %10 : vector<1x128xf32> to vector<128xf32>
    %c0_i32 = arith.constant 0 : i32
    %12 = arith.cmpi eq, %arg1, %c0_i32 : i32
    %13 = arith.extui %12 : i1 to i32
    %c0_i32_6 = arith.constant 0 : i32
    %14 = arith.cmpi ne, %13, %c0_i32_6 : i32
    scf.if %14 {
      %c0_49 = arith.constant 0 : index
      %c0_50 = arith.constant 0 : index
      %c0_51 = arith.constant 0 : index
      %146 = vector.load %arg2[%c0_49, %c0_50, %c0_51] : memref<1x16x128xf32, #tpu.memory_space<vmem>>, vector<1x16x128xf32>
      %147 = vector.shape_cast %146 : vector<1x16x128xf32> to vector<16x128xf32>
      %cst_52 = arith.constant dense<0.000000e+00> : vector<16xf32>
      %148 = vector.multi_reduction <add>, %147, %cst_52 [1] : vector<16x128xf32> to vector<16xf32>
      %149 = vector.shape_cast %148 : vector<16xf32> to vector<16x1xf32>
      %cst_53 = arith.constant 1.280000e+02 : f32
      %150 = vector.broadcast %cst_53 : f32 to vector<16x1xf32>
      %151 = arith.divf %149, %150 : vector<16x1xf32>
      %152 = vector.broadcast %151 : vector<16x1xf32> to vector<16x128xf32>
      %153 = arith.subf %147, %152 : vector<16x128xf32>
      %154 = arith.mulf %153, %153 : vector<16x128xf32>
      %cst_54 = arith.constant dense<0.000000e+00> : vector<16xf32>
      %155 = vector.multi_reduction <add>, %154, %cst_54 [1] : vector<16x128xf32> to vector<16xf32>
      %156 = vector.shape_cast %155 : vector<16xf32> to vector<16x1xf32>
      %cst_55 = arith.constant 1.280000e+02 : f32
      %157 = vector.broadcast %cst_55 : f32 to vector<16x1xf32>
      %158 = arith.divf %156, %157 : vector<16x1xf32>
      %159 = vector.broadcast %151 : vector<16x1xf32> to vector<16x128xf32>
      %160 = arith.subf %147, %159 : vector<16x128xf32>
      %cst_56 = arith.constant 9.99999974E-6 : f32
      %161 = vector.broadcast %cst_56 : f32 to vector<16x1xf32>
      %162 = arith.addf %158, %161 : vector<16x1xf32>
      %163 = math.rsqrt %162 : vector<16x1xf32>
      %164 = vector.broadcast %163 : vector<16x1xf32> to vector<16x128xf32>
      %165 = arith.mulf %160, %164 : vector<16x128xf32>
      %166 = vector.shape_cast %1 : vector<128xf32> to vector<1x128xf32>
      %167 = vector.broadcast %166 : vector<1x128xf32> to vector<16x128xf32>
      %168 = arith.mulf %165, %167 : vector<16x128xf32>
      %169 = vector.shape_cast %3 : vector<128xf32> to vector<1x128xf32>
      %170 = vector.broadcast %169 : vector<1x128xf32> to vector<16x128xf32>
      %171 = arith.addf %168, %170 : vector<16x128xf32>
      %172 = arith.truncf %171 : vector<16x128xf32> to vector<16x128xbf16>
      %c0_57 = arith.constant 0 : index
      %c0_58 = arith.constant 0 : index
      %173 = vector.load %arg6[%c0_57, %c0_58] : memref<128x384xbf16, #tpu.memory_space<vmem>>, vector<128x384xbf16>
      %cst_59 = arith.constant dense<0.000000e+00> : vector<16x384xf32>
      %174 = tpu.matmul %172, %173, %cst_59 {dimension_numbers = #tpu.dot_dimension_numbers<[1], [0], [0], [1], [0, 0, 1, 1], [], []>} : vector<16x128xbf16>, vector<128x384xbf16>, vector<16x384xf32> -> vector<16x384xf32>
      %c0_60 = arith.constant 0 : index
      %c0_61 = arith.constant 0 : index
      %175 = vector.load %arg4[%c0_60, %c0_61] : memref<1x384xf32, #tpu.memory_space<vmem>>, vector<1x384xf32>
      %176 = vector.shape_cast %175 : vector<1x384xf32> to vector<384xf32>
      %177 = vector.shape_cast %176 : vector<384xf32> to vector<1x384xf32>
      %178 = vector.broadcast %177 : vector<1x384xf32> to vector<16x384xf32>
      %179 = arith.addf %174, %178 : vector<16x384xf32>
      %180 = vector.extract_strided_slice %179 {offsets = [0, 0], sizes = [16, 128], strides = [1, 1]} : vector<16x384xf32> to vector<16x128xf32>
      %cst_62 = arith.constant 0.176776692 : f32
      %181 = vector.broadcast %cst_62 : f32 to vector<16x128xf32>
      %182 = arith.mulf %180, %181 : vector<16x128xf32>
      %183 = arith.truncf %182 : vector<16x128xf32> to vector<16x128xbf16>
      %c0_63 = arith.constant 0 : index
      %c0_64 = arith.constant 0 : index
      %184 = vector.load %arg11[%c0_63, %c0_64] : memref<16x384xbf16, #tpu.memory_space<vmem>>, vector<16x128xbf16>
      tpu.vector_store %arg11[%c0_63, %c0_64], %183 {strides = array<i32>} : memref<16x384xbf16, #tpu.memory_space<vmem>>, vector<16x128xbf16>,
      %185 = vector.extract_strided_slice %179 {offsets = [0, 128], sizes = [16, 256], strides = [1, 1]} : vector<16x384xf32> to vector<16x256xf32>
      %186 = arith.truncf %185 : vector<16x256xf32> to vector<16x256xbf16>
      %c0_65 = arith.constant 0 : index
      %c128_66 = arith.constant 128 : index
      %187 = vector.load %arg11[%c0_65, %c128_66] : memref<16x384xbf16, #tpu.memory_space<vmem>>, vector<16x256xbf16>
      tpu.vector_store %arg11[%c0_65, %c128_66], %186 {strides = array<i32>} : memref<16x384xbf16, #tpu.memory_space<vmem>>, vector<16x256xbf16>,
    } else {
    }
    %c8_i32 = arith.constant 8 : i32
    %15 = arith.muli %arg1, %c8_i32 : i32
    %16 = tpu.assume_multiple %15, 8 : i32
    %c0_7 = arith.constant 0 : index
    %17 = arith.index_cast %16 : i32 to index
    %c0_8 = arith.constant 0 : index
    %18 = vector.load %arg2[%c0_7, %17, %c0_8] : memref<1x16x128xf32, #tpu.memory_space<vmem>>, vector<1x8x128xf32>
    %19 = vector.shape_cast %18 : vector<1x8x128xf32> to vector<8x128xf32>
    %20 = arith.index_cast %16 : i32 to index
    %c0_9 = arith.constant 0 : index
    %21 = vector.load %arg11[%20, %c0_9] : memref<16x384xbf16, #tpu.memory_space<vmem>>, vector<8x128xbf16>
    %c0_10 = arith.constant 0 : index
    %c128 = arith.constant 128 : index
    %22 = vector.load %arg11[%c0_10, %c128] : memref<16x384xbf16, #tpu.memory_space<vmem>>, vector<16x128xbf16>
    %c0_11 = arith.constant 0 : index
    %c256 = arith.constant 256 : index
    %23 = vector.load %arg11[%c0_11, %c256] : memref<16x384xbf16, #tpu.memory_space<vmem>>, vector<16x128xbf16>
    %24 = vector.extract_strided_slice %21 {offsets = [0, 0], sizes = [8, 32], strides = [1, 1]} : vector<8x128xbf16> to vector<8x32xbf16>
    %25 = vector.extract_strided_slice %22 {offsets = [0, 0], sizes = [16, 32], strides = [1, 1]} : vector<16x128xbf16> to vector<16x32xbf16>
    %cst = arith.constant dense<0.000000e+00> : vector<8x16xf32>
    %26 = tpu.matmul %24, %25, %cst {dimension_numbers = #tpu.dot_dimension_numbers<[1], [1], [0], [0], [0, 0, 1, 0], [], []>} : vector<8x32xbf16>, vector<16x32xbf16>, vector<8x16xf32> -> vector<8x16xf32>
    %cst_12 = arith.constant dense<0xFF800000> : vector<8xf32>
    %27 = vector.multi_reduction <maximumf>, %26, %cst_12 [1] : vector<8x16xf32> to vector<8xf32>
    %28 = vector.shape_cast %27 : vector<8xf32> to vector<8x1xf32>
    %29 = vector.broadcast %28 : vector<8x1xf32> to vector<8x16xf32>
    %30 = arith.subf %26, %29 : vector<8x16xf32>
    %31 = math.exp %30 : vector<8x16xf32>
    %cst_13 = arith.constant dense<0.000000e+00> : vector<8xf32>
    %32 = vector.multi_reduction <add>, %31, %cst_13 [1] : vector<8x16xf32> to vector<8xf32>
    %33 = vector.shape_cast %32 : vector<8xf32> to vector<8x1xf32>
    %34 = tpu.reciprocal %33 {approx = true} : vector<8x1xf32> -> vector<8x1xf32>
    %35 = vector.broadcast %34 : vector<8x1xf32> to vector<8x16xf32>
    %36 = arith.mulf %31, %35 : vector<8x16xf32>
    %37 = arith.truncf %36 : vector<8x16xf32> to vector<8x16xbf16>
    %38 = vector.extract_strided_slice %23 {offsets = [0, 0], sizes = [16, 32], strides = [1, 1]} : vector<16x128xbf16> to vector<16x32xbf16>
    %cst_14 = arith.constant dense<0.000000e+00> : vector<8x32xf32>
    %39 = tpu.matmul %37, %38, %cst_14 {dimension_numbers = #tpu.dot_dimension_numbers<[1], [0], [0], [1], [0, 0, 1, 1], [], []>} : vector<8x16xbf16>, vector<16x32xbf16>, vector<8x32xf32> -> vector<8x32xf32>
    %40 = vector.extract_strided_slice %21 {offsets = [0, 32], sizes = [8, 32], strides = [1, 1]} : vector<8x128xbf16> to vector<8x32xbf16>
    %41 = vector.extract_strided_slice %22 {offsets = [0, 32], sizes = [16, 32], strides = [1, 1]} : vector<16x128xbf16> to vector<16x32xbf16>
    %cst_15 = arith.constant dense<0.000000e+00> : vector<8x16xf32>
    %42 = tpu.matmul %40, %41, %cst_15 {dimension_numbers = #tpu.dot_dimension_numbers<[1], [1], [0], [0], [0, 0, 1, 0], [], []>} : vector<8x32xbf16>, vector<16x32xbf16>, vector<8x16xf32> -> vector<8x16xf32>
    %cst_16 = arith.constant dense<0xFF800000> : vector<8xf32>
    %43 = vector.multi_reduction <maximumf>, %42, %cst_16 [1] : vector<8x16xf32> to vector<8xf32>
    %44 = vector.shape_cast %43 : vector<8xf32> to vector<8x1xf32>
    %45 = vector.broadcast %44 : vector<8x1xf32> to vector<8x16xf32>
    %46 = arith.subf %42, %45 : vector<8x16xf32>
    %47 = math.exp %46 : vector<8x16xf32>
    %cst_17 = arith.constant dense<0.000000e+00> : vector<8xf32>
    %48 = vector.multi_reduction <add>, %47, %cst_17 [1] : vector<8x16xf32> to vector<8xf32>
    %49 = vector.shape_cast %48 : vector<8xf32> to vector<8x1xf32>
    %50 = tpu.reciprocal %49 {approx = true} : vector<8x1xf32> -> vector<8x1xf32>
    %51 = vector.broadcast %50 : vector<8x1xf32> to vector<8x16xf32>
    %52 = arith.mulf %47, %51 : vector<8x16xf32>
    %53 = arith.truncf %52 : vector<8x16xf32> to vector<8x16xbf16>
    %54 = vector.extract_strided_slice %23 {offsets = [0, 32], sizes = [16, 32], strides = [1, 1]} : vector<16x128xbf16> to vector<16x32xbf16>
    %cst_18 = arith.constant dense<0.000000e+00> : vector<8x32xf32>
    %55 = tpu.matmul %53, %54, %cst_18 {dimension_numbers = #tpu.dot_dimension_numbers<[1], [0], [0], [1], [0, 0, 1, 1], [], []>} : vector<8x16xbf16>, vector<16x32xbf16>, vector<8x32xf32> -> vector<8x32xf32>
    %56 = vector.extract_strided_slice %21 {offsets = [0, 64], sizes = [8, 32], strides = [1, 1]} : vector<8x128xbf16> to vector<8x32xbf16>
    %57 = vector.extract_strided_slice %22 {offsets = [0, 64], sizes = [16, 32], strides = [1, 1]} : vector<16x128xbf16> to vector<16x32xbf16>
    %cst_19 = arith.constant dense<0.000000e+00> : vector<8x16xf32>
    %58 = tpu.matmul %56, %57, %cst_19 {dimension_numbers = #tpu.dot_dimension_numbers<[1], [1], [0], [0], [0, 0, 1, 0], [], []>} : vector<8x32xbf16>, vector<16x32xbf16>, vector<8x16xf32> -> vector<8x16xf32>
    %cst_20 = arith.constant dense<0xFF800000> : vector<8xf32>
    %59 = vector.multi_reduction <maximumf>, %58, %cst_20 [1] : vector<8x16xf32> to vector<8xf32>
    %60 = vector.shape_cast %59 : vector<8xf32> to vector<8x1xf32>
    %61 = vector.broadcast %60 : vector<8x1xf32> to vector<8x16xf32>
    %62 = arith.subf %58, %61 : vector<8x16xf32>
    %63 = math.exp %62 : vector<8x16xf32>
    %cst_21 = arith.constant dense<0.000000e+00> : vector<8xf32>
    %64 = vector.multi_reduction <add>, %63, %cst_21 [1] : vector<8x16xf32> to vector<8xf32>
    %65 = vector.shape_cast %64 : vector<8xf32> to vector<8x1xf32>
    %66 = tpu.reciprocal %65 {approx = true} : vector<8x1xf32> -> vector<8x1xf32>
    %67 = vector.broadcast %66 : vector<8x1xf32> to vector<8x16xf32>
    %68 = arith.mulf %63, %67 : vector<8x16xf32>
    %69 = arith.truncf %68 : vector<8x16xf32> to vector<8x16xbf16>
    %70 = vector.extract_strided_slice %23 {offsets = [0, 64], sizes = [16, 32], strides = [1, 1]} : vector<16x128xbf16> to vector<16x32xbf16>
    %cst_22 = arith.constant dense<0.000000e+00> : vector<8x32xf32>
    %71 = tpu.matmul %69, %70, %cst_22 {dimension_numbers = #tpu.dot_dimension_numbers<[1], [0], [0], [1], [0, 0, 1, 1], [], []>} : vector<8x16xbf16>, vector<16x32xbf16>, vector<8x32xf32> -> vector<8x32xf32>
    %72 = vector.extract_strided_slice %21 {offsets = [0, 96], sizes = [8, 32], strides = [1, 1]} : vector<8x128xbf16> to vector<8x32xbf16>
    %73 = vector.extract_strided_slice %22 {offsets = [0, 96], sizes = [16, 32], strides = [1, 1]} : vector<16x128xbf16> to vector<16x32xbf16>
    %cst_23 = arith.constant dense<0.000000e+00> : vector<8x16xf32>
    %74 = tpu.matmul %72, %73, %cst_23 {dimension_numbers = #tpu.dot_dimension_numbers<[1], [1], [0], [0], [0, 0, 1, 0], [], []>} : vector<8x32xbf16>, vector<16x32xbf16>, vector<8x16xf32> -> vector<8x16xf32>
    %cst_24 = arith.constant dense<0xFF800000> : vector<8xf32>
    %75 = vector.multi_reduction <maximumf>, %74, %cst_24 [1] : vector<8x16xf32> to vector<8xf32>
    %76 = vector.shape_cast %75 : vector<8xf32> to vector<8x1xf32>
    %77 = vector.broadcast %76 : vector<8x1xf32> to vector<8x16xf32>
    %78 = arith.subf %74, %77 : vector<8x16xf32>
    %79 = math.exp %78 : vector<8x16xf32>
    %cst_25 = arith.constant dense<0.000000e+00> : vector<8xf32>
    %80 = vector.multi_reduction <add>, %79, %cst_25 [1] : vector<8x16xf32> to vector<8xf32>
    %81 = vector.shape_cast %80 : vector<8xf32> to vector<8x1xf32>
    %82 = tpu.reciprocal %81 {approx = true} : vector<8x1xf32> -> vector<8x1xf32>
    %83 = vector.broadcast %82 : vector<8x1xf32> to vector<8x16xf32>
    %84 = arith.mulf %79, %83 : vector<8x16xf32>
    %85 = arith.truncf %84 : vector<8x16xf32> to vector<8x16xbf16>
    %86 = vector.extract_strided_slice %23 {offsets = [0, 96], sizes = [16, 32], strides = [1, 1]} : vector<16x128xbf16> to vector<16x32xbf16>
    %cst_26 = arith.constant dense<0.000000e+00> : vector<8x32xf32>
    %87 = tpu.matmul %85, %86, %cst_26 {dimension_numbers = #tpu.dot_dimension_numbers<[1], [0], [0], [1], [0, 0, 1, 1], [], []>} : vector<8x16xbf16>, vector<16x32xbf16>, vector<8x32xf32> -> vector<8x32xf32>
    %88 = tpu.concatenate %39, %55, %71, %87 in 1 : vector<8x32xf32>, vector<8x32xf32>, vector<8x32xf32>, vector<8x32xf32> -> vector<8x128xf32>
    %89 = arith.truncf %88 : vector<8x128xf32> to vector<8x128xbf16>
    %c0_27 = arith.constant 0 : index
    %c0_28 = arith.constant 0 : index
    %90 = vector.load %arg7[%c0_27, %c0_28] : memref<128x128xbf16, #tpu.memory_space<vmem>>, vector<128x128xbf16>
    %cst_29 = arith.constant dense<0.000000e+00> : vector<8x128xf32>
    %91 = tpu.matmul %89, %90, %cst_29 {dimension_numbers = #tpu.dot_dimension_numbers<[1], [0], [0], [1], [0, 0, 1, 1], [], []>} : vector<8x128xbf16>, vector<128x128xbf16>, vector<8x128xf32> -> vector<8x128xf32>
    %92 = vector.shape_cast %9 : vector<128xf32> to vector<1x128xf32>
    %93 = vector.broadcast %92 : vector<1x128xf32> to vector<8x128xf32>
    %94 = arith.addf %91, %93 : vector<8x128xf32>
    %95 = arith.addf %94, %19 : vector<8x128xf32>
    %cst_30 = arith.constant dense<0.000000e+00> : vector<8xf32>
    %96 = vector.multi_reduction <add>, %95, %cst_30 [1] : vector<8x128xf32> to vector<8xf32>
    %97 = vector.shape_cast %96 : vector<8xf32> to vector<8x1xf32>
    %cst_31 = arith.constant 1.280000e+02 : f32
    %98 = vector.broadcast %cst_31 : f32 to vector<8x1xf32>
    %99 = arith.divf %97, %98 : vector<8x1xf32>
    %100 = vector.broadcast %99 : vector<8x1xf32> to vector<8x128xf32>
    %101 = arith.subf %95, %100 : vector<8x128xf32>
    %102 = arith.mulf %101, %101 : vector<8x128xf32>
    %cst_32 = arith.constant dense<0.000000e+00> : vector<8xf32>
    %103 = vector.multi_reduction <add>, %102, %cst_32 [1] : vector<8x128xf32> to vector<8xf32>
    %104 = vector.shape_cast %103 : vector<8xf32> to vector<8x1xf32>
    %cst_33 = arith.constant 1.280000e+02 : f32
    %105 = vector.broadcast %cst_33 : f32 to vector<8x1xf32>
    %106 = arith.divf %104, %105 : vector<8x1xf32>
    %107 = vector.broadcast %99 : vector<8x1xf32> to vector<8x128xf32>
    %108 = arith.subf %95, %107 : vector<8x128xf32>
    %cst_34 = arith.constant 9.99999974E-6 : f32
    %109 = vector.broadcast %cst_34 : f32 to vector<8x1xf32>
    %110 = arith.addf %106, %109 : vector<8x1xf32>
    %111 = math.rsqrt %110 : vector<8x1xf32>
    %112 = vector.broadcast %111 : vector<8x1xf32> to vector<8x128xf32>
    %113 = arith.mulf %108, %112 : vector<8x128xf32>
    %114 = vector.shape_cast %5 : vector<128xf32> to vector<1x128xf32>
    %115 = vector.broadcast %114 : vector<1x128xf32> to vector<8x128xf32>
    %116 = arith.mulf %113, %115 : vector<8x128xf32>
    %117 = vector.shape_cast %7 : vector<128xf32> to vector<1x128xf32>
    %118 = vector.broadcast %117 : vector<1x128xf32> to vector<8x128xf32>
    %119 = arith.addf %116, %118 : vector<8x128xf32>
    %120 = arith.truncf %119 : vector<8x128xf32> to vector<8x128xbf16>
    %c0_35 = arith.constant 0 : index
    %c0_36 = arith.constant 0 : index
    %121 = vector.load %arg8[%c0_35, %c0_36] : memref<128x256xbf16, #tpu.memory_space<vmem>>, vector<128x256xbf16>
    %cst_37 = arith.constant dense<0.000000e+00> : vector<8x256xf32>
    %122 = tpu.matmul %120, %121, %cst_37 {dimension_numbers = #tpu.dot_dimension_numbers<[1], [0], [0], [1], [0, 0, 1, 1], [], []>} : vector<8x128xbf16>, vector<128x256xbf16>, vector<8x256xf32> -> vector<8x256xf32>
    %c0_38 = arith.constant 0 : index
    %c0_39 = arith.constant 0 : index
    %123 = vector.load %arg5[%c0_38, %c0_39] : memref<1x256xf32, #tpu.memory_space<vmem>>, vector<1x256xf32>
    %124 = vector.shape_cast %123 : vector<1x256xf32> to vector<256xf32>
    %125 = vector.shape_cast %124 : vector<256xf32> to vector<1x256xf32>
    %126 = vector.broadcast %125 : vector<1x256xf32> to vector<8x256xf32>
    %127 = arith.addf %122, %126 : vector<8x256xf32>
    %cst_40 = arith.constant 5.000000e-01 : f32
    %128 = vector.broadcast %cst_40 : f32 to vector<8x256xf32>
    %129 = arith.mulf %128, %127 : vector<8x256xf32>
    %cst_41 = arith.constant 0.707106769 : f32
    %130 = vector.broadcast %cst_41 : f32 to vector<8x256xf32>
    %131 = arith.mulf %127, %130 : vector<8x256xf32>
    %132 = math.erf %131 : vector<8x256xf32>
    %cst_42 = arith.constant 1.000000e+00 : f32
    %133 = vector.broadcast %cst_42 : f32 to vector<8x256xf32>
    %134 = arith.addf %133, %132 : vector<8x256xf32>
    %135 = arith.mulf %129, %134 : vector<8x256xf32>
    %136 = arith.truncf %135 : vector<8x256xf32> to vector<8x256xbf16>
    %c0_43 = arith.constant 0 : index
    %c0_44 = arith.constant 0 : index
    %137 = vector.load %arg9[%c0_43, %c0_44] : memref<256x128xbf16, #tpu.memory_space<vmem>>, vector<256x128xbf16>
    %cst_45 = arith.constant dense<0.000000e+00> : vector<8x128xf32>
    %138 = tpu.matmul %136, %137, %cst_45 {dimension_numbers = #tpu.dot_dimension_numbers<[1], [0], [0], [1], [0, 0, 1, 1], [], []>} : vector<8x256xbf16>, vector<256x128xbf16>, vector<8x128xf32> -> vector<8x128xf32>
    %139 = vector.shape_cast %11 : vector<128xf32> to vector<1x128xf32>
    %140 = vector.broadcast %139 : vector<1x128xf32> to vector<8x128xf32>
    %141 = arith.addf %138, %140 : vector<8x128xf32>
    %142 = arith.addf %141, %95 : vector<8x128xf32>
    %c0_46 = arith.constant 0 : index
    %c0_47 = arith.constant 0 : index
    %c0_48 = arith.constant 0 : index
    %143 = vector.load %arg10[%c0_46, %c0_47, %c0_48] : memref<1x8x128xf32, #tpu.memory_space<vmem>>, vector<1x8x128xf32>
    %144 = vector.shape_cast %143 : vector<1x8x128xf32> to vector<8x128xf32>
    %145 = vector.shape_cast %142 : vector<8x128xf32> to vector<1x8x128xf32>
    tpu.vector_store %arg10[%c0_46, %c0_47, %c0_48], %145 {strides = array<i32>} : memref<1x8x128xf32, #tpu.memory_space<vmem>>, vector<1x8x128xf32>,
    return
  }
  func.func @transform_0(%arg0: i32, %arg1: i32) -> (i32, i32, i32) {
    %c0_i32 = arith.constant 0 : i32
    %c0_i32_0 = arith.constant 0 : i32
    %c0_i32_1 = arith.constant 0 : i32
    return %arg0, %c0_i32, %c0_i32_0 : i32, i32, i32
  }
  func.func @transform_1(%arg0: i32, %arg1: i32) -> (i32, i32) {
    %c0_i32 = arith.constant 0 : i32
    %c0_i32_0 = arith.constant 0 : i32
    %c0_i32_1 = arith.constant 0 : i32
    return %c0_i32, %c0_i32_0 : i32, i32
  }
  func.func @transform_2(%arg0: i32, %arg1: i32) -> (i32, i32) {
    %c0_i32 = arith.constant 0 : i32
    %c0_i32_0 = arith.constant 0 : i32
    %c0_i32_1 = arith.constant 0 : i32
    return %c0_i32, %c0_i32_0 : i32, i32
  }
  func.func @transform_3(%arg0: i32, %arg1: i32) -> (i32, i32) {
    %c0_i32 = arith.constant 0 : i32
    %c0_i32_0 = arith.constant 0 : i32
    %c0_i32_1 = arith.constant 0 : i32
    return %c0_i32, %c0_i32_0 : i32, i32
  }
  func.func @transform_4(%arg0: i32, %arg1: i32) -> (i32, i32) {
    %c0_i32 = arith.constant 0 : i32
    %c0_i32_0 = arith.constant 0 : i32
    %c0_i32_1 = arith.constant 0 : i32
    return %c0_i32, %c0_i32_0 : i32, i32
  }
  func.func @transform_5(%arg0: i32, %arg1: i32) -> (i32, i32) {
    %c0_i32 = arith.constant 0 : i32
    %c0_i32_0 = arith.constant 0 : i32
    %c0_i32_1 = arith.constant 0 : i32
    return %c0_i32, %c0_i32_0 : i32, i32
  }
  func.func @transform_6(%arg0: i32, %arg1: i32) -> (i32, i32) {
    %c0_i32 = arith.constant 0 : i32
    %c0_i32_0 = arith.constant 0 : i32
    %c0_i32_1 = arith.constant 0 : i32
    return %c0_i32, %c0_i32_0 : i32, i32
  }
  func.func @transform_7(%arg0: i32, %arg1: i32) -> (i32, i32) {
    %c0_i32 = arith.constant 0 : i32
    %c0_i32_0 = arith.constant 0 : i32
    %c0_i32_1 = arith.constant 0 : i32
    return %c0_i32, %c0_i32_0 : i32, i32
  }
  func.func @transform_8(%arg0: i32, %arg1: i32) -> (i32, i32, i32) {
    %c0_i32 = arith.constant 0 : i32
    %c0_i32_0 = arith.constant 0 : i32
    return %arg0, %arg1, %c0_i32 : i32, i32, i32
  }
}

</mosaic_0001>

<bundles_post_ra>
// kernel: tpu_custom_call.1
= control target key start
LH: loop header
LB: loop body
LE: loop exit
PB: predicated region body
PF: predicated region fallthrough
CT: control target
= control target key end

     0   :  { %s3159_s0 = inlined_call_operand.hbm [shape: f32[2,16,128], index: 0, kind: input, shape index: {}]   ;;  %s3160_s1 = inlined_call_operand.hbm [shape: f32[6,128], index: 1, kind: input, shape index: {}]   ;;  %s3161_s2 = inlined_call_operand.vmem [shape: f32[1,384], index: 2, kind: input, shape index: {}]   ;;  %s3162_s3 = inlined_call_operand.vmem [shape: f32[1,256], index: 3, kind: input, shape index: {}]   ;;  %s3163_s4 = inlined_call_operand.hbm [shape: bf16[128,384], index: 4, kind: input, shape index: {}]   ;;  %s3164_s5 = inlined_call_operand.hbm [shape: bf16[128,128], index: 5, kind: input, shape index: {}]   ;;  %s3165_s6 = inlined_call_operand.hbm [shape: bf16[128,256], index: 6, kind: input, shape index: {}]   ;;  %s3166_s7 = inlined_call_operand.hbm [shape: bf16[256,128], index: 7, kind: input, shape index: {}]   ;;  %s3167_s8 = inlined_call_operand.hbm [shape: f32[2,16,128], index: 8, kind: output, shape index: {}]  }
   0x1   :  { %3174 = sst [smem:[#allocation23_spill]] %s3160_s1 }
   0x2   :  { %3175 = sst [smem:[#allocation24_spill]] %s3161_s2 }
   0x3   :  { %3176 = sst [smem:[#allocation25_spill]] %s3162_s3 }
   0x4   :  { %3177 = sst [smem:[#allocation26_spill]] %s3163_s4 }
   0x5   :  { %3178 = sst [smem:[#allocation27_spill]] %s3164_s5 }
   0x6   :  { %3179 = sst [smem:[#allocation28_spill]] %s3165_s6 }
   0x7   :  { %3180 = sst [smem:[#allocation29_spill]] %s3166_s7 }
   0x8   :  { %3181 = sst [smem:[#allocation30_spill]] %s3167_s8 }
   0x9   :  { %13 = vsyncpa [#allocation4], 0 }
   0xa   :  { %15 = vsyncpa [#allocation4 + $0x1], 0 }
   0xb   :  { %16 = vsyncpa [#allocation7], 0 }
   0xc   :  { %17 = vsyncpa [#allocation10], 0 }
   0xd   :  { %18 = vsyncpa [#allocation13], 0 }
   0xe   :  { %19 = vsyncpa [#allocation5], 0 }
   0xf   :  { %21 = vsyncpa [#allocation5 + $0x1], 0  ;;  %s2734_s27 = smov 0   ;;  %s2736_s28 = smov 0  }
  0x10   :  { %s2738_s29 = smov 0   ;;  %s2740_s30 = smov 0  }
  0x11   :  { %s2742_s9 = smov 0   ;;  %s2744_s10 = smov 0  }
  0x12   :  { %s2746_s11 = smov 0   ;;  %s2748_s12 = smov 0  }
  0x13   :  { %s2750_s13 = smov 0   ;;  %s2752_s14 = smov 0  }
  0x14   :  { %s2754_s15 = smov 0  }
  0x15 LB: > { %3182 = sst [smem:[#allocation20_spill]] %s2653_s12  ;;  %s1835_s16 = sadd.s32 4294967295, %s2665_s15   ;;  %s2665_s15 = sphi %s2754_s15, %s27_s15   ;;  %s2661_s14 = sphi %s2752_s14, %s3218_s14   ;;  %s2657_s13 = sphi %s2750_s13, %s3217_s13   ;;  %s2653_s12 = sphi %s2748_s12, %s3216_s12   ;;  %s2649_s11 = sphi %s2746_s11, %s3215_s11   ;;  %s2645_s10 = sphi %s2744_s10, %s3214_s10   ;;  %s2641_s9 = sphi %s2742_s9, %s3213_s9   ;;  %s2637_s30 = sphi %s2740_s30, %s3212_s30   ;;  %s2633_s29 = sphi %s2738_s29, %s3211_s29   ;;  %s2629_s28 = sphi %s2736_s28, %s3210_s28   ;;  %s2625_s27 = sphi %s2734_s27, %s3209_s27  }
  0x16   : > { %p1837_p0 = scmp.ge.s32.totalorder %s2665_s15, 1  ;;  %p2791_p1 = scmp.eq.s32.totalorder %s1835_s16, 0 }
  0x17   : > { %p2795_p2 = scmp.eq.s32.totalorder %s1835_s16, 3  ;;  %p245_p3 = scmp.lt.s32.totalorder %s2665_s15, 5 }
  0x18   : > { %s2667_s20 = smov [#allocation6]   ;;  %s2668_s22 = smov [#allocation9]  }
  0x19   : > { %p2800_p4 = pnand %p1837_p0, %p245_p3  ;;  %s258_s21 = sshll.u32 %s2667_s20, 4  ;;  %s259_s21 = int_to_ptr.vmem [resolvable:$true] %s258_s21 }
  0x1a   : > { %s287_s23 = sshll.u32 %s2668_s22, 4  ;;  %s2669_s25 = smov [#allocation8]   ;;  %s2806_s23 = int_to_ptr.vmem [resolvable:$true] %s287_s23 }
  0x1b   : > { %p2122_p5 = pneg %p2800_p4  ;;  %s274_s26 = sshll.u32 %s2669_s25, 4  ;;  %s275_s26 = int_to_ptr.vmem [resolvable:$true] %s274_s26 }
  0x1c   : > { %s2386_s20 = scalar_lea.vmem %s259_s21, 128  ;;  %p2394_p11 = scmp.lt.s32.totalorder %s259_s21, %s259_s21 }
  0x1d   : > { %p2810_p6 = pnand %p2122_p5, %p2791_p1  ;;  %p2387_p8 = scmp.ne.s32.totalorder %s259_s21, %s2386_s20 }
  0x1e   : > { %p2395_p12 = scmp.lt.s32.totalorder %s2386_s20, %s2386_s20 }
  0x1f   : > { %p2816_p7 = pneg %p2810_p6 }
  0x20   : > { %p2396_p13 = por %p2395_p12, %p2394_p11 }
  0x21   : > { %p2389_p9 = pnand %p2387_p8, %p2816_p7 }
  0x23   : > { %p2390_p10 = pneg %p2389_p9 }
  0x25   : > { %p2397_p0 = pnand %p2396_p13, %p2390_p10 }
  0x27   : > { %2400 = shalt.err (!%p2397_p0)
}
  0x28   : > { %s3188_s1 = sld [smem:[#allocation23_spill]]  ;;  %s2412_s8 = scalar_lea.vmem %s2806_s23, 1024 }
  0x29   : > { %p2413_p3 = scmp.ne.s32.totalorder %s2806_s23, %s2412_s8  ;;  %p2420_p9 = scmp.lt.s32.totalorder %s2806_s23, %s2806_s23 }
  0x2a   : > { %p2421_p11 = scmp.lt.s32.totalorder %s2412_s8, %s2412_s8 }
  0x2b   : > { %p2415_p5 = pnand %p2413_p3, %p2816_p7 }
  0x2c   : > { %p2422_p10 = por %p2421_p11, %p2420_p9 }
  0x2d   : > { %p2416_p8 = pneg %p2415_p5 }
  0x2e   : > { %2125 = dma.hbm_to_vmem [thread:$0]  (!%p2810_p6), %s3188_s1, 128, %s259_s21, [#allocation7]  }
  0x2f   : > { %p2423_p12 = pnand %p2422_p10, %p2416_p8 }
  0x31   : > { %2426 = shalt.err (!%p2423_p12)
}
  0x32   : > { %s3169_s20 = smov 64   ;;  %s2671_s22 = smov 4  }
  0x33   : > { %s3189_s5 = sld [smem:[#allocation27_spill]]  ;;  %s2438_s1 = scalar_lea.vmem %s275_s26, 3072 }
  0x34   : > { %p2439_p13 = scmp.ne.s32.totalorder %s275_s26, %s2438_s1  ;;  %p2446_p5 = scmp.lt.s32.totalorder %s275_s26, %s275_s26 }
  0x35   : > { %p2447_p8 = scmp.lt.s32.totalorder %s2438_s1, %s2438_s1 }
  0x36   : > { %p2441_p0 = pnand %p2439_p13, %p2816_p7 }
  0x37   : > { %p2448_p9 = por %p2447_p8, %p2446_p5 }
  0x38   : > { %p2442_p3 = pneg %p2441_p0 }
  0x39   : > { %2131 = dma.hbm_to_vmem [thread:$0]  (!%p2810_p6), %s3189_s5, 1024, %s2806_s23, [#allocation10], %s3169_s20, %s3169_s20, %s2671_s22  }
  0x3a   : > { %p2449_p11 = pnand %p2448_p9, %p2442_p3 }
  0x3c   : > { %2452 = shalt.err (!%p2449_p11)
}
  0x3d   : > { %s2672_s8 = smov 192   ;;  %s2673_s12 = smov 12  }
  0x3e   : > { %s3190_s4 = sld [smem:[#allocation26_spill]]  ;;  %s2674_s23 = smov [#allocation11]  }
  0x3f   : > { %s300_s21 = sshll.u32 %s2674_s23, 4  ;;  %s301_s21 = int_to_ptr.vmem [resolvable:$true] %s300_s21 }
  0x40   : > { %s2464_s25 = scalar_lea.vmem %s301_s21, 2048  ;;  %p2472_p0 = scmp.lt.s32.totalorder %s301_s21, %s301_s21 }
  0x41   : > { %p2465_p10 = scmp.ne.s32.totalorder %s301_s21, %s2464_s25  ;;  %p2473_p3 = scmp.lt.s32.totalorder %s2464_s25, %s2464_s25 }
  0x43   : > { %p2467_p12 = pnand %p2465_p10, %p2816_p7  ;;  %p2474_p5 = por %p2473_p3, %p2472_p0 }
  0x44   : > { %2128 = dma.hbm_to_vmem [thread:$0]  (!%p2810_p6), %s3190_s4, 3072, %s275_s26, [#allocation7], %s2672_s8, %s2672_s8, %s2673_s12  }
  0x45   : > { %p2468_p13 = pneg %p2467_p12 }
  0x47   : > { %p2475_p8 = pnand %p2474_p5, %p2468_p13 }
  0x49   : > { %2478 = shalt.err (!%p2475_p8)
}
  0x4a   : > { %s3170_s1 = smov 128   ;;  %s3171_s20 = smov 8  }
  0x4b   : > { %s3191_s6 = sld [smem:[#allocation28_spill]]  ;;  %s2677_s12 = smov [#allocation12]  }
  0x4c   : > { %s313_s26 = sshll.u32 %s2677_s12, 4  ;;  %s314_s26 = int_to_ptr.vmem [resolvable:$true] %s313_s26 }
  0x4d   : > { %s2490_s8 = scalar_lea.vmem %s314_s26, 2048  ;;  %p2498_p12 = scmp.lt.s32.totalorder %s314_s26, %s314_s26 }
  0x4e   : > { %p2491_p9 = scmp.ne.s32.totalorder %s314_s26, %s2490_s8  ;;  %p2499_p13 = scmp.lt.s32.totalorder %s2490_s8, %s2490_s8 }
  0x50   : > { %p2493_p11 = pnand %p2491_p9, %p2816_p7  ;;  %p2500_p0 = por %p2499_p13, %p2498_p12 }
  0x51   : > { %2134 = dma.hbm_to_vmem [thread:$0]  (!%p2810_p6), %s3191_s6, 2048, %s301_s21, [#allocation10], %s3170_s1, %s3170_s1, %s3171_s20  }
  0x52   : > { %p2494_p10 = pneg %p2493_p11 }
  0x54   : > { %p2501_p3 = pnand %p2500_p0, %p2494_p10 }
  0x56   : > { %2504 = shalt.err (!%p2501_p3)
}
  0x57   : > { %s3192_s23 = smov 64   ;;  %s3193_s7 = sld [smem:[#allocation29_spill]] }
  0x58   : > { %s1836_s24 = sadd.s32 4294967294, %s2665_s15   ;;  %s36_s16 = sadd.s32 1, %s2657_s13 }
  0x59   : > { %p37_p7 = scmp.ge.s32.totalorder %s36_s16, 2  ;;  %s39_s2 = sadd.s32 1, %s2661_s14 }
  0x5a   : > { %s46_s3 = sadd.s32 1, %s2645_s10  ;;  %p53_p5 = scmp.ne.s32.totalorder %s2645_s10, %s2641_s9 }
  0x5b   : > { %s3220_s16 = smov (%p37_p7, %s36_s16), 0  ;;  %s3222_s2 = smov (!%p37_p7, %s39_s2), %s2661_s14 }
  0x5c   : > { %3194 = sst [smem:[#allocation21_spill]] %s3220_s16  ;;  %p54_p8 = scmp.eq.s32.totalorder %s2665_s15, 0 }
  0x5d   : > { %2137 = dma.hbm_to_vmem [thread:$0]  (!%p2810_p6), %s3193_s7, 2048, %s314_s26, [#allocation13], %s3192_s23, %s3192_s23, %s2671_s22  }
  0x5e   : > { %p59_p6 = scmp.ne.s32.totalorder %s2641_s9, %s2637_s30  ;;  %p41_p9 = scmp.ge.s32.totalorder %s3222_s2, 2 }
  0x5f   : > { %s217_s22 = ssub.s32 %s2657_s13, %s3220_s16  ;;  %p2883_p11 = por %p54_p8, %p53_p5 }
  0x60   : > { %p2889_p10 = por %p2791_p1, %p59_p6  ;;  %s3224_s2 = smov (%p41_p9, %s3222_s2), 0 }
  0x61   : > { %3197 = sst [smem:[#allocation22_spill]] %s3224_s2  ;;  %s221_s8 = sadd.s32 1, %s2633_s29 }
  0x62   : > { %p231_p12 = scmp.ne.s32.totalorder %s2633_s29, %s2629_s28  ;;  %s43_s30 = ssub.s32 %s2661_s14, %s3224_s2 }
  0x63   : > { %p237_p13 = scmp.ne.s32.totalorder %s2629_s28, %s2625_s27  ;;  %p44_p0 = scmp.eq.s32.totalorder %s43_s30, 0 }
  0x64   : > { %s218_s23 = sor.u32 %s217_s22, %s43_s30  ;;  %p2904_p7 = por %p2795_p2, %p231_p12 }
  0x65   : > { %p219_p3 = scmp.eq.s32.totalorder %s218_s23, 0  ;;  %p238_p5 = scmp.eq.s32.totalorder %s1836_s24, 3 }
  0x66   : > { %s2909_s21 = scalar_select %p44_p0, %s2645_s10, %s46_s3  }
  0x67   : > { %s2912_s1 = scalar_select %p219_p3, %s2633_s29, %s221_s8  }
  0x68   : > { %p2151_p8 = scmp.lt.s32.totalorder %s2665_s15, 4  ;;  %s327_s20 = sand.u32 1, %s2645_s10  }
  0x69   : > { %s1948_s4 = sshll.u32 %s2661_s14, 8  ;;  %p2917_p6 = por %p238_p5, %p237_p13 }
  0x6a   : > { %s1844_s6 = sshll.u32 %s327_s20, 4  ;;  %s337_s18 = scalar_lea.hbm %s3159_s0, %s1948_s4 }
  0x6b   : > { %p2926_p2 = pnand %p2151_p8, %p2883_p11  ;;  %s331_s3 = scalar_lea.vmem [#allocation3], %s1844_s6 }
  0x6c   : > { %s338_s24 = sshll.u32 %s331_s3, 4  ;;  %s328_s8 = scalar_lea.sflag [#allocation4], %s327_s20  ;;  %s339_s24 = int_to_ptr.vmem [resolvable:$true] %s338_s24 }
  0x6d   : > { %p2507_p9 = pneg %p2926_p2  ;;  %s2518_s7 = scalar_lea.vmem %s339_s24, 256 }
  0x6e   : > { %p2519_p12 = scmp.ne.s32.totalorder %s339_s24, %s2518_s7  ;;  %s2678_s2 = smov [#allocation3]  }
  0x6f   : > { %s2523_s16 = sshll.u32 %s2678_s2, 4  ;;  %s2524_s16 = int_to_ptr.vmem [resolvable:$false] %s2523_s16 }
  0x70   : > { %p2521_p13 = pnand %p2519_p12, %p2507_p9  ;;  %s2525_s4 = scalar_lea.vmem %s2524_s16, 512 }
  0x71   : > { %p2526_p3 = scmp.lt.s32.totalorder %s339_s24, %s2524_s16  ;;  %p2527_p11 = scmp.lt.s32.totalorder %s2525_s4, %s2518_s7 }
  0x72   : > { %p2522_p0 = pneg %p2521_p13 }
  0x73   : > { %p2528_p5 = por %p2527_p11, %p2526_p3 }
  0x75   : > { %p2529_p8 = pnand %p2528_p5, %p2522_p0 }
  0x77   : > { %2532 = shalt.err (!%p2529_p8)
}
  0x78   : > { %s3201_s6 = smov 8   ;;  %s3202_s12 = smov 128  }
  0x79   : > { %2141 = dma.hbm_to_vmem [thread:$0]  (!%p2926_p2), %s337_s18, 256, %s339_s24, %s328_s8, %s3202_s12, %s3202_s12, %s3201_s6  }
  0x7a   : > { %350 = sbr.rel (%p2800_p4) target bundleno = 2970 (0xb9a), region = 52  ;;  %s352_s20 = sand.u32 (!%p2800_p4), 1, %s2641_s9  }
  0x7b   : > { %s1848_s2 = sshll.u32 (!%p2800_p4), %s352_s20, 4  ;;  %s353_s22 = scalar_lea.sflag (!%p2800_p4), [#allocation4], %s352_s20 }
  0x7c   : > { %s2940_s30 = scalar_lea.vmem (!%p2800_p4), [#allocation3], %s1848_s2 }
  0x7f   : > { %2604 = dma.done.wait (%p2889_p10), %s353_s22, 256  }
  0x80   : > { %2606 = vsyncadd (%p2889_p10), %s353_s22, 4294967040 }
  0x81   : > { %2608 = dma.done.wait (%p2791_p1), [#allocation7], 3200  }
  0x82   : > { %2610 = vsyncadd (%p2791_p1), [#allocation7], 4294964096 }
  0x83   : > { %2612 = dma.done.wait (%p2791_p1), [#allocation10], 3072  }
  0x84   : > { %2614 = vsyncadd (%p2791_p1), [#allocation10], 4294964224 }
  0x85   : > { %2616 = dma.done.wait (%p2791_p1), [#allocation13], 2048  }
  0x86   : > { %2618 = vsyncadd (%p2791_p1), [#allocation13], 4294965248  ;;  %s406_s7 = sand.u32 1, %s2629_s28   ;;  %v2963_v0 = vld [vmem:[#allocation6] ss:$0 sm:$0xff]  ;;  %p1855_p1 = scmp.ne.s32.totalorder %s2649_s11, 0 }
  0x87   : > { %s2961_s19 = sshll.u32 %s406_s7, 3  ;;  %v2965_v1 = vld [vmem:[#allocation6 + $0x1] ss:$0 sm:$0xff]  ;;  %v2967_v2 = vld [vmem:[#allocation6 + $0x2] ss:$0 sm:$0xff]  ;;  %s3203_s18 = sld [smem:[#allocation24_spill]] (!%p1855_p1) }
  0x88   : > { %v2969_v3 = vld [vmem:[#allocation6 + $0x3] ss:$0 sm:$0xff]  ;;  %v2971_v4 = vld [vmem:[#allocation6 + $0x4] ss:$0 sm:$0xff]  ;;  %v2973_v5 = vld [vmem:[#allocation6 + $0x5] ss:$0 sm:$0xff] }
  0x89   : > { %s408_s17 = scalar_lea.vmem [#allocation14], %s2961_s19  ;;  %419 = sbr.rel (%p1855_p1) target bundleno = 659 (0x293), region = 80 }
  0x8e   : > { %v420_v6 = vld [vmem:[%s2940_s30] sm:$0xff]  ;;  %v421_v7 = vld [vmem:[%s2940_s30 + $0x8] sm:$0xff]  ;;  %v2679_v10 = vmov 0.0   ;;  %v2680_v33 = vmov 0   ;;  %vm2681_vm0 = vmmov 0   ;;  %v492_v57 = vlaneseq }
  0x8f   : > { %422 = vadd.xlane.f32.xlu0 %v420_v6  ;;  %v2266_v8 = vld [vmem:[#allocation8 + $0xac] ss:$12 sps:$4 sm:$0xff]   ;;  %v2268_v9 = vld [vmem:[#allocation8 + $0xa8] ss:$12 sps:$4 sm:$0xff]   ;;  %2010 = vmatprep.subr.bf16.mxu1 %v2679_v10  ;;  %v2269_v11 = vld [vmem:[#allocation8 + $0xb0] ss:$12 sps:$4 sm:$0xff]  }
  0x90   : > { %635 = vmatprep.subr.bf16.mxu0 %v2266_v8  ;;  %2011 = vmatpush3.bf16.msra.mxu1 %v2269_v11  ;;  %v2270_v20 = vld [vmem:[#allocation8 + $0x94] ss:$12 sps:$4 sm:$0xff]   ;;  %v2272_v21 = vld [vmem:[#allocation8 + $0x90] ss:$12 sps:$4 sm:$0xff]   ;;  %v2273_v22 = vld [vmem:[#allocation8 + $0x98] ss:$12 sps:$4 sm:$0xff]  }
  0x91   : > { %636 = vmatpush1.bf16.msra.mxu0 %v2268_v9  ;;  %2012 = vmatprep.subr.bf16.mxu1 %v2679_v10  ;;  %v2274_v23 = vld [vmem:[#allocation8 + $0x7c] ss:$12 sps:$4 sm:$0xff]   ;;  %v2276_v24 = vld [vmem:[#allocation8 + $0x78] ss:$12 sps:$4 sm:$0xff]   ;;  %v2277_v25 = vld [vmem:[#allocation8 + $0x80] ss:$12 sps:$4 sm:$0xff]  }
  0x92   : > { %637 = vmatprep.subr.bf16.mxu0 %v2270_v20  ;;  %v2278_v26 = vld [vmem:[#allocation8 + $0x64] ss:$12 sps:$4 sm:$0xff]   ;;  %v2280_v27 = vld [vmem:[#allocation8 + $0x60] ss:$12 sps:$4 sm:$0xff]   ;;  %v2281_v28 = vld [vmem:[#allocation8 + $0x68] ss:$12 sps:$4 sm:$0xff]   ;;  %667 = vmatprep.mubr.bf16.mxu0 %v2680_v33 }
  0x93   : > { %424 = vadd.xlane.f32.xlu0 %v421_v7  ;;  %v2282_v29 = vld [vmem:[#allocation8 + $0x4c] ss:$12 sps:$4 sm:$0xff]   ;;  %v2284_v30 = vld [vmem:[#allocation8 + $0x48] ss:$12 sps:$4 sm:$0xff]   ;;  %v2285_v31 = vld [vmem:[#allocation8 + $0x50] ss:$12 sps:$4 sm:$0xff]   ;;  %2026 = vmatprep.mubr.msk.bf16.mxu1 %vm2681_vm0, %v2679_v10 }
  0x94   : > { %2013 = vmatpush3.bf16.msra.mxu1 %v2273_v22  ;;  %v2286_v32 = vld [vmem:[#allocation8 + $0x34] ss:$12 sps:$4 sm:$0xff]   ;;  %v2288_v34 = vld [vmem:[#allocation8 + $0x30] ss:$12 sps:$4 sm:$0xff]   ;;  %v2289_v35 = vld [vmem:[#allocation8 + $0x38] ss:$12 sps:$4 sm:$0xff]  }
  0x95   : > { %638 = vmatpush1.bf16.msra.mxu0 %v2272_v21  ;;  %2014 = vmatprep.subr.bf16.mxu1 %v2679_v10  ;;  %v2290_v36 = vld [vmem:[#allocation8 + $0x1c] ss:$12 sps:$4 sm:$0xff]   ;;  %v2292_v37 = vld [vmem:[#allocation8 + $0x18] ss:$12 sps:$4 sm:$0xff]   ;;  %v2293_v38 = vld [vmem:[#allocation8 + $0x20] ss:$12 sps:$4 sm:$0xff]  }
  0x96   : > { %639 = vmatprep.subr.bf16.mxu0 %v2274_v23  ;;  %v2294_v39 = vld [vmem:[#allocation8 + $0x4] ss:$12 sps:$4 sm:$0xff]   ;;  %v2296_v40 = vld [vmem:[#allocation8] ss:$12 sps:$4 sm:$0xff]   ;;  %v2297_v41 = vld [vmem:[#allocation8 + $0x8] ss:$12 sps:$4 sm:$0xff]  }
  0x97   : > { %v493_v58 = vshrl.u32 %v492_v57, 7  ;;  %v490_v60 = vld [vmem:[%s3203_s18] sm:$0x7] }
  0x98   : > { %2015 = vmatpush3.bf16.msra.mxu1 %v2277_v25 }
  0x99   : > { %640 = vmatpush1.bf16.msra.mxu0 %v2276_v24  ;;  %2016 = vmatprep.subr.bf16.mxu1 %v2679_v10  ;;  %v494_v59 = vsub.s32 0, %v493_v58  ;;  %v502_v61 = vsub.s32 2, %v493_v58  ;;  %v498_v62 = vsub.s32 1, %v493_v58 }
  0x9a   : > { %641 = vmatprep.subr.bf16.mxu0 %v2278_v26 }
  0x9b   : > { %v495_v63 = vrot.slane %v490_v60, %v494_v59 }
  0x9c   : > { %2017 = vmatpush3.bf16.msra.mxu1 %v2281_v28 }
  0x9d   : > { %642 = vmatpush1.bf16.msra.mxu0 %v2280_v27  ;;  %2018 = vmatprep.subr.bf16.mxu1 %v2679_v10 }
  0x9e   : > { %643 = vmatprep.subr.bf16.mxu0 %v2282_v29 }
  0xa0   : > { %2019 = vmatpush3.bf16.msra.mxu1 %v2285_v31 }
  0xa1   : > { %644 = vmatpush1.bf16.msra.mxu0 %v2284_v30  ;;  %2020 = vmatprep.subr.bf16.mxu1 %v2679_v10 }
  0xa2   : > { %645 = vmatprep.subr.bf16.mxu0 %v2286_v32 }
  0xa4   : > { %2021 = vmatpush3.bf16.msra.mxu1 %v2289_v35 }
  0xa5   : > { %646 = vmatpush1.bf16.msra.mxu0 %v2288_v34  ;;  %2022 = vmatprep.subr.bf16.mxu1 %v2679_v10 }
  0xa6   : > { %647 = vmatprep.subr.bf16.mxu0 %v2290_v36 }
  0xa8   : > { %2023 = vmatpush3.bf16.msra.mxu1 %v2293_v38 }
  0xa9   : > { %648 = vmatpush1.bf16.msra.mxu0 %v2292_v37  ;;  %2024 = vmatprep.subr.bf16.mxu1 %v2679_v10 }
  0xaa   : > { %649 = vmatprep.subr.bf16.mxu0 %v2294_v39 }
  0xac   : > { %2025 = vmatpush3.bf16.msra.mxu1 %v2297_v41 }
  0xad   : > { %650 = vmatpush1.bf16.msra.mxu0 %v2296_v40 }
 0x118   : > { %v423_v12 = vpop.xlane.xlu0 %422 }
 0x119   : > { %v427_v13 = vmul.f32 0.0078125, %v423_v12 }
 0x11b   : > { %v2981_v14 = vsub.f32 %v420_v6, %v427_v13  ;;  %v503_v6 = vrot.slane %v490_v60, %v502_v61 }
 0x11c   : > { %v425_v15 = vpop.xlane.xlu0 %424 }
 0x11d   : > { %v428_v16 = vmul.f32 0.0078125, %v425_v15  ;;  %v431_v17 = vmul.f32 %v2981_v14, %v2981_v14 }
 0x11f   : > { %v2985_v18 = vsub.f32 %v421_v7, %v428_v16  ;;  %433 = vadd.xlane.f32.xlu1 %v431_v17  ;;  %v499_v7 = vrot.slane %v490_v60, %v498_v62 }
 0x121   : > { %v432_v19 = vmul.f32 %v2985_v18, %v2985_v18 }
 0x123   : > { %435 = vadd.xlane.f32.xlu1 %v432_v19 }
 0x1a8   : > { %v434_v42 = vpop.xlane.xlu1 %433 }
 0x1a9   : > { %v437_v43 = vmul.f32 0.0078125, %v434_v42 }
 0x1ab   : > { %v439_v44 = vadd.f32 1e-05, %v437_v43 }
 0x1ac   : > { %v436_v45 = vpop.xlane.xlu1 %435 }
 0x1ad   : > { %2298 = vrsqrt.f32 %v439_v44  ;;  %v438_v46 = vmul.f32 0.0078125, %v436_v45 }
 0x1af   : > { %v440_v47 = vadd.f32 1e-05, %v438_v46 }
 0x1b1   : > { %2300 = vrsqrt.f32 %v440_v47 }
 0x1ba   : > { %v2299_v48 = vpop.eup %2298 }
 0x1bb   : > { %v443_v49 = vmul.f32 %v2299_v48, %v2981_v14 }
 0x1bd   : > { %v449_v52 = vmul.f32 %v2963_v0, %v443_v49 }
 0x1be   : > { %v2301_v50 = vpop.eup %2300 }
 0x1bf   : > { %v444_v51 = vmul.f32 %v2301_v50, %v2985_v18  ;;  %v455_v54 = vadd.f32 %v2965_v1, %v449_v52 }
 0x1c1   : > { %v450_v53 = vmul.f32 %v2963_v0, %v444_v51 }
 0x1c3   : > { %v456_v55 = vadd.f32 %v2965_v1, %v450_v53 }
 0x1c5   : > { %v457_v56 = vpack.c.bf16 %v456_v55, %v455_v54 }
 0x1c7   : > { %668 = vmatmul.mubr.bf16.vlgmr.msra.gmra.mxu0 %v457_v56  ;;  %2027 = vmatmul.mubr.bf16.vlgmr.msra.gmra.mxu1 %v457_v56 }
 0x287   : > { %v669_v0 = vpop.f32.mrf.mxu0  ;;  %v712_v8 = vpop.f32.mrf.mxu1 }
 0x288   : > { %v670_v9 = vadd.f32 %v669_v0, %v495_v63  ;;  %v713_v12 = vadd.f32 %v712_v8, %v503_v6 }
 0x289   : > { %v671_v10 = vpop.f32.mrf.mxu0  ;;  %v2028_v1 = vpop.f32.mrf.mxu1 }
 0x28a   : > { %v719_v11 = vmul.f32 0.17677669, %v670_v9  ;;  %v672_v13 = vadd.f32 %v671_v10, %v499_v7 }
 0x28b   : > { %v673_v14 = vpop.f32.mrf.mxu0  ;;  %v715_v15 = vpop.f32.mrf.mxu1 }
 0x28c   : > { %v1949_v16 = vpack.c.bf16 %v719_v11, %v719_v11  ;;  %v1951_v17 = vpack.c.bf16 %v713_v12, %v672_v13  ;;  %v674_v18 = vadd.f32 %v673_v14, %v495_v63  ;;  %v716_v22 = vadd.f32 %v715_v15, %v503_v6 }
 0x28d   : > { %v675_v19 = vpop.f32.mrf.mxu0  ;;  %v2029_v20 = vpop.f32.mrf.mxu1 }
 0x28e   : > { %729 = vst [vmem:[#allocation2] sm:$0xf] %v1949_v16  ;;  %743 = vst [vmem:[#allocation2 + $0x4] sm:$0xff] %v1951_v17  ;;  %v720_v21 = vmul.f32 0.17677669, %v674_v18  ;;  %v676_v23 = vadd.f32 %v675_v19, %v499_v7 }
 0x290   : > { %v1950_v24 = vpack.c.bf16 %v720_v21, %v720_v21  ;;  %v1952_v25 = vpack.c.bf16 %v716_v22, %v676_v23 }
 0x292   : > { %730 = vst [vmem:[#allocation2 + $0xc] sm:$0xf] %v1950_v24  ;;  %744 = vst [vmem:[#allocation2 + $0x10] sm:$0xff] %v1952_v25 }
 0x293 PF: > { %vm763_vm1 = vcmask 261120   ;;  %v2682_v26 = vmov 0.0   ;;  %s1886_s23 = sshll.u32 %s2649_s11, 3  ;;  %vm2683_vm2 = vmmov 0   ;;  %vm810_vm3 = vcmask 130048   ;;  %s2684_s4 = smov 96  }
 0x294   : > { %2030 = vmatprep.subr.bf16.mxu0 %v2682_v26  ;;  %2054 = vmatprep.subr.bf16.mxu1 %v2682_v26  ;;  %s748_s3 = sshra.s32 %s1886_s23, 3  ;;  %s2685_s6 = smov 64   ;;  %vm1212_vm4 = vcmask 523264   ;;  %vm1214_vm5 = vcmask 785408  }
 0x295   : > { %2032 = vmatprep.mubr.msk.bf16.mxu0 %vm2683_vm2, %v2682_v26  ;;  %2056 = vmatprep.mubr.msk.bf16.mxu1 %vm2683_vm2, %v2682_v26  ;;  %s1953_s24 = smul.u32 12, %s748_s3  ;;  %s2686_s12 = smov 32  }
 0x296   : > { %s746_s20 = scalar_lea.vmem %s2940_s30, %s1886_s23 [#allocation3]  ;;  %s3204_s30 = sld [smem:[#allocation25_spill]] }
 0x297   : > { %s752_s8 = scalar_lea.vmem [#allocation2], %s1953_s24  ;;  %s3205_s16 = sld [smem:[#allocation20_spill]] }
 0x298   : > { %s1700_s3 = sshll.u32 %s408_s17, 4  ;;  %s1701_s3 = int_to_ptr.vmem [resolvable:$true] %s1700_s3 }
 0x299   : > { %v2302_v27 = vld [vmem:[#allocation2 + $0x4] ss:$12 sps:$4 sm:$0xff]   ;;  %v753_v29 = vld [vmem:[%s752_s8] sm:$0xf]  ;;  %v3026_v41 = vld [vmem:[#allocation2 + $0x8] ss:$12 sps:$4 sm:$0xff]  }
 0x29a   : > { %v768_v28 = vsel %vm763_vm1, %v2302_v27, 0  ;;  %877 = vrot.lane.b32.xlu1 %v2302_v27, %s2684_s4  ;;  %v1892_v35 = vcombine.low %v753_v29, %v753_v29 }
 0x29b   : > { %2031 = vmatpush3.bf16.xpose.msra.mxu0 %v768_v28 }
 0x29c   : > { %2036 = vmatprep.subr.bf16.mxu0 %v2682_v26 }
 0x29d   : > { %s1944_s26 = sshll.u32 %s3205_s16, 1 }
 0x29e   : > { %875 = vrot.lane.b32.xlu1 %v1892_v35, %s2684_s4  ;;  %s1696_s18 = sadd.s32 %s2649_s11, %s1944_s26  ;;  %s1685_s11 = scalar_lea.sflag [#allocation5], %s406_s7 }
 0x29f   : > { %s1945_s23 = sshll.u32 %s1696_s18, 7 }
 0x2a2   : > { %2033 = vmatmul.mubr.msk.bf16.vlgmr.msra.gmra.mxu0 %vm763_vm1, %v753_v29  ;;  %983 = vrot.lane.b32.xlu1 %v1892_v35, %s2685_s6 }
 0x2a3   : > { %2038 = vmatprep.mubr.msk.bf16.mxu0 %vm2683_vm2, %v2682_v26  ;;  %2037 = vmatpush3.bf16.msra.mxu0 %v3026_v41 }
 0x2a4   : > { %2042 = vmatprep.subr.bf16.mxu0 %v2682_v26 }
 0x2a6   : > { %1093 = vrot.lane.b32.xlu1 %v2302_v27, %s2686_s12 }
 0x2aa   : > { %1091 = vrot.lane.b32.xlu1 %v1892_v35, %s2686_s12 }
 0x30c   : > { %v878_v42 = vpop.permute.xlu1 %877 }
 0x30d   : > { %v883_v54 = vsel %vm763_vm1, %v878_v42, 0 }
 0x310   : > { %v876_v43 = vpop.permute.xlu1 %875 }
 0x314   : > { %v984_v45 = vpop.permute.xlu1 %983 }
 0x318   : > { %v1094_v48 = vpop.permute.xlu1 %1093 }
 0x319   : > { %v1099_v49 = vsel %vm763_vm1, %v1094_v48, 0  ;;  %v2308_v48 = vld [vmem:[#allocation9 + $0x20] sm:$0xff]  }
 0x31c   : > { %v1092_v53 = vpop.permute.xlu1 %1091 }
 0x362   : > { %v804_v30 = vpop.f32.mrf.mxu0 }
 0x363   : > { %v811_v31 = vsel %vm810_vm3, %v804_v30, -inf }
 0x364   : > { %812 = vmax.xlane.f32.xlu0 %v811_v31  ;;  %v2034_v32 = vpop.f32.mrf.mxu0 }
 0x366   : > { %v807_v33 = vpop.f32.mrf.mxu0 }
 0x368   : > { %v2035_v34 = vpop.f32.mrf.mxu0 }
 0x3ed   : > { %v813_v36 = vpop.xlane.xlu0 %812 }
 0x3ee   : > { %v814_v37 = vsub.f32 %v804_v30, %v813_v36 }
 0x3f0   : > { %v815_v38 = vmul.f32 1.442695, %v814_v37 }
 0x3f2   : > { %2353 = vpow2.f32 %v815_v38 }
 0x3ff   : > { %v2354_v39 = vpop.eup %2353 }
 0x400   : > { %v817_v40 = vsel %vm810_vm3, %v2354_v39, 0.0 }
 0x401   : > { %818 = vadd.xlane.f32.xlu0 %v817_v40 }
 0x417   : > { %985 = vrot.lane.b32.xlu0 %v2302_v27, %s2685_s6 }
 0x48a   : > { %v819_v44 = vpop.xlane.xlu0 %818 }
 0x48b   : > { %2355 = vrcp.f32 %v819_v44 }
 0x48e   : > { %v986_v46 = vpop.permute.xlu0 %985 }
 0x48f   : > { %v991_v47 = vsel %vm763_vm1, %v986_v46, 0  ;;  %v2306_v46 = vld [vmem:[#allocation9 + $0x30] sm:$0xff]  }
 0x490   : > { %2055 = vmatpush3.bf16.xpose.msra.mxu1 %v991_v47  ;;  %v2307_v47 = vld [vmem:[#allocation9 + $0x28] sm:$0xff]  }
 0x491   : > { %2066 = vmatprep.subr.bf16.mxu1 %v2682_v26 }
 0x497   : > { %2057 = vmatmul.mubr.msk.bf16.vlgmr.msra.gmra.mxu1 %vm763_vm1, %v984_v45  ;;  %v2305_v45 = vld [vmem:[#allocation9 + $0x38] sm:$0xff]  }
 0x498   : > { %v2356_v50 = vpop.eup %2355  ;;  %2067 = vmatpush3.bf16.xpose.msra.mxu1 %v1099_v49  ;;  %2068 = vmatprep.mubr.msk.bf16.mxu1 %vm2683_vm2, %v2682_v26  ;;  %v2309_v49 = vld [vmem:[#allocation9 + $0x18] sm:$0xff]  }
 0x499   : > { %v821_v51 = vmul.f32 %v2356_v50, %v2354_v39  ;;  %2078 = vmatprep.subr.bf16.mxu1 %v2682_v26  ;;  %v2310_v50 = vld [vmem:[#allocation9 + $0x10] sm:$0xff]  }
 0x49b   : > { %v822_v52 = vpack.c.bf16 %v821_v51, %v821_v51  ;;  %v2311_v51 = vld [vmem:[#allocation9 + $0x8] sm:$0xff]  }
 0x49d   : > { %2039 = vmatmul.mubr.msk.bf16.vlgmr.msra.gmra.mxu0 %vm810_vm3, %v822_v52 }
 0x49e   : > { %2043 = vmatpush3.bf16.xpose.msra.mxu0 %v883_v54  ;;  %2044 = vmatprep.mubr.msk.bf16.mxu0 %vm2683_vm2, %v2682_v26  ;;  %v2312_v54 = vld [vmem:[#allocation9] sm:$0xff]  }
 0x49f   : > { %2069 = vmatmul.mubr.msk.bf16.vlgmr.msra.gmra.mxu1 %vm763_vm1, %v1092_v53  ;;  %2048 = vmatprep.subr.bf16.mxu0 %v2682_v26 }
 0x4a0   : > { %2094 = vmatprep.mubr.msk.bf16.mxu1 %vm2683_vm2, %v2682_v26  ;;  %2079 = vmatpush3.bf16.msra.mxu1 %v2305_v45 }
 0x4a1   : > { %2080 = vmatprep.subr.bf16.mxu1 %v2682_v26 }
 0x4a4   : > { %2081 = vmatpush3.bf16.msra.mxu1 %v2306_v46 }
 0x4a5   : > { %2045 = vmatmul.mubr.msk.bf16.vlgmr.msra.gmra.mxu0 %vm763_vm1, %v876_v43  ;;  %2082 = vmatprep.subr.bf16.mxu1 %v2682_v26 }
 0x4a6   : > { %2050 = vmatprep.mubr.msk.bf16.mxu0 %vm2683_vm2, %v2682_v26 }
 0x4a8   : > { %2083 = vmatpush3.bf16.msra.mxu1 %v2307_v47 }
 0x4a9   : > { %2084 = vmatprep.subr.bf16.mxu1 %v2682_v26 }
 0x4ac   : > { %2085 = vmatpush3.bf16.msra.mxu1 %v2308_v48 }
 0x4ad   : > { %2086 = vmatprep.subr.bf16.mxu1 %v2682_v26 }
 0x4b0   : > { %2087 = vmatpush3.bf16.msra.mxu1 %v2309_v49  ;;  %v2339_v49 = vld [vmem:[#allocation12 + $0x70] sm:$0xff]  }
 0x4b1   : > { %2088 = vmatprep.subr.bf16.mxu1 %v2682_v26 }
 0x4b4   : > { %2089 = vmatpush3.bf16.msra.mxu1 %v2310_v50  ;;  %v2340_v50 = vld [vmem:[#allocation12 + $0x30] sm:$0xff]  }
 0x4b5   : > { %2090 = vmatprep.subr.bf16.mxu1 %v2682_v26 }
 0x4b8   : > { %2091 = vmatpush3.bf16.msra.mxu1 %v2311_v51  ;;  %v2341_v51 = vld [vmem:[#allocation12 + $0x68] sm:$0xff]  }
 0x4b9   : > { %2092 = vmatprep.subr.bf16.mxu1 %v2682_v26 }
 0x4bc   : > { %2093 = vmatpush3.bf16.msra.mxu1 %v2312_v54  ;;  %v2344_v54 = vld [vmem:[#allocation12 + $0x20] sm:$0xff]  }
 0x557   : > { %v1027_v55 = vpop.f32.mrf.mxu1 }
 0x558   : > { %v1033_v56 = vsel %vm810_vm3, %v1027_v55, -inf }
 0x559   : > { %1034 = vmax.xlane.f32.xlu0 %v1033_v56  ;;  %v2058_v57 = vpop.f32.mrf.mxu1 }
 0x55b   : > { %v1030_v58 = vpop.f32.mrf.mxu1 }
 0x55d   : > { %v3050_v59 = vpop.f32.mrf.mxu0  ;;  %v2059_v60 = vpop.f32.mrf.mxu1 }
 0x55f   : > { %v2040_v61 = vpop.f32.mrf.mxu0  ;;  %v1135_v62 = vpop.f32.mrf.mxu1 }
 0x560   : > { %v1141_v11 = vsel %vm810_vm3, %v1135_v62, -inf }
 0x561   : > { %v869_v63 = vpop.f32.mrf.mxu0  ;;  %v2070_v6 = vpop.f32.mrf.mxu1 }
 0x563   : > { %v2041_v7 = vpop.f32.mrf.mxu0  ;;  %v1138_v0 = vpop.f32.mrf.mxu1 }
 0x565   : > { %v919_v8 = vpop.f32.mrf.mxu0  ;;  %v2071_v9 = vpop.f32.mrf.mxu1 }
 0x566   : > { %v925_v10 = vsel %vm810_vm3, %v919_v8, -inf }
 0x567   : > { %926 = vmax.xlane.f32.xlu1 %v925_v10  ;;  %v2046_v1 = vpop.f32.mrf.mxu0 }
 0x569   : > { %v922_v12 = vpop.f32.mrf.mxu0 }
 0x56a   : > { %v747_v12 = vld [vmem:[%s746_s20] sm:$0xff]  ;;  %s2688_s20 = smov [#allocation14]  }
 0x56b   : > { %1142 = vmax.xlane.f32.xlu1 %v1141_v11  ;;  %v2047_v13 = vpop.f32.mrf.mxu0  ;;  %s2537_s2 = sshll.u32 %s2688_s20, 4  ;;  %s2538_s2 = int_to_ptr.vmem [resolvable:$false] %s2537_s2 }
 0x56c   : > { %s2539_s22 = scalar_lea.vmem %s2538_s2, 256  ;;  %p2540_p9 = scmp.lt.s32.totalorder %s1701_s3, %s2538_s2 }
 0x5e2   : > { %v1035_v14 = vpop.xlane.xlu0 %1034 }
 0x5e3   : > { %v1036_v15 = vsub.f32 %v1027_v55, %v1035_v14 }
 0x5e5   : > { %v1037_v16 = vmul.f32 1.442695, %v1036_v15 }
 0x5e7   : > { %2357 = vpow2.f32 %v1037_v16 }
 0x5f0   : > { %v927_v17 = vpop.xlane.xlu1 %926 }
 0x5f1   : > { %v928_v18 = vsub.f32 %v919_v8, %v927_v17 }
 0x5f3   : > { %v929_v23 = vmul.f32 1.442695, %v928_v18 }
 0x5f4   : > { %v2358_v19 = vpop.eup %2357  ;;  %v1143_v20 = vpop.xlane.xlu1 %1142 }
 0x5f5   : > { %v1144_v21 = vsub.f32 %v1135_v62, %v1143_v20  ;;  %v1039_v22 = vsel %vm810_vm3, %v2358_v19, 0.0  ;;  %v2318_v20 = vld [vmem:[#allocation11 + $0x64] ss:$8 sps:$4 sm:$0xff]  }
 0x5f6   : > { %1040 = vadd.xlane.f32.xlu0 %v1039_v22 }
 0x5f7   : > { %v1145_v24 = vmul.f32 1.442695, %v1144_v21  ;;  %v2316_v21 = vld [vmem:[#allocation11 + $0x60] ss:$8 sps:$4 sm:$0xff]  }
 0x5f9   : > { %2359 = vpow2.f32 %v1145_v24 }
 0x5fa   : > { %2361 = vpow2.f32 %v929_v23 }
 0x606   : > { %v2360_v25 = vpop.eup %2359 }
 0x607   : > { %v1147_v27 = vsel %vm810_vm3, %v2360_v25, 0.0  ;;  %v2362_v28 = vpop.eup %2361 }
 0x608   : > { %1148 = vadd.xlane.f32.xlu1 %v1147_v27  ;;  %v931_v29 = vsel %vm810_vm3, %v2362_v28, 0.0  ;;  %v2319_v27 = vld [vmem:[#allocation11 + $0x50] ss:$8 sps:$4 sm:$0xff]  }
 0x60c   : > { %932 = vadd.xlane.f32.xlu1 %v931_v29  ;;  %937 = vrot.lane.b32.xlu0 %v3026_v41, %s2684_s4  ;;  %v2324_v29 = vld [vmem:[#allocation11 + $0x44] ss:$8 sps:$4 sm:$0xff]  }
 0x61d   : > { %1045 = vrot.lane.b32.xlu1 %v3026_v41, %s2685_s6 }
 0x621   : > { %1153 = vrot.lane.b32.xlu1 %v3026_v41, %s2686_s12 }
 0x67f   : > { %v1041_v30 = vpop.xlane.xlu0 %1040 }
 0x683   : > { %v938_v31 = vpop.permute.xlu0 %937 }
 0x684   : > { %2049 = vmatpush3.bf16.msra.mxu0 %v938_v31  ;;  %v2325_v31 = vld [vmem:[#allocation11 + $0x30] ss:$8 sps:$4 sm:$0xff]  }
 0x685   : > { %2060 = vmatprep.subr.bf16.mxu0 %v2682_v26 }
 0x691   : > { %v1149_v32 = vpop.xlane.xlu1 %1148 }
 0x695   : > { %v933_v33 = vpop.xlane.xlu1 %932 }
 0x696   : > { %2363 = vrcp.f32 %v933_v33  ;;  %v2330_v33 = vld [vmem:[#allocation11 + $0x24] ss:$8 sps:$4 sm:$0xff]  }
 0x697   : > { %2365 = vrcp.f32 %v1041_v30  ;;  %v2327_v30 = vld [vmem:[#allocation11 + $0x34] ss:$8 sps:$4 sm:$0xff]  }
 0x698   : > { %2367 = vrcp.f32 %v1149_v32  ;;  %v2687_v32 = vmov 0  }
 0x699   : > { %v1046_v36 = vpop.permute.xlu1 %1045 }
 0x69d   : > { %v1154_v40 = vpop.permute.xlu1 %1153 }
 0x6a3   : > { %v2364_v34 = vpop.eup %2363 }
 0x6a4   : > { %v935_v35 = vmul.f32 %v2364_v34, %v2362_v28  ;;  %v2366_v38 = vpop.eup %2365  ;;  %v2322_v28 = vld [vmem:[#allocation11 + $0x40] ss:$8 sps:$4 sm:$0xff]  }
 0x6a5   : > { %v1043_v39 = vmul.f32 %v2366_v38, %v2358_v19  ;;  %v2368_v42 = vpop.eup %2367  ;;  %v2313_v19 = vld [vmem:[#allocation11 + $0x70] ss:$8 sps:$4 sm:$0xff]   ;;  %v2328_v34 = vld [vmem:[#allocation11 + $0x20] ss:$8 sps:$4 sm:$0xff]  }
 0x6a6   : > { %v936_v37 = vpack.c.bf16 %v935_v35, %v935_v35  ;;  %v1151_v43 = vmul.f32 %v2368_v42, %v2360_v25  ;;  %v2321_v25 = vld [vmem:[#allocation11 + $0x54] ss:$8 sps:$4 sm:$0xff]   ;;  %v2334_v38 = vld [vmem:[#allocation11] ss:$8 sps:$4 sm:$0xff]  }
 0x6a7   : > { %v1044_v41 = vpack.c.bf16 %v1043_v39, %v1043_v39  ;;  %v2333_v35 = vld [vmem:[#allocation11 + $0x14] ss:$8 sps:$4 sm:$0xff]  }
 0x6a8   : > { %2051 = vmatmul.mubr.msk.bf16.vlgmr.msra.gmra.mxu0 %vm810_vm3, %v936_v37  ;;  %v1152_v44 = vpack.c.bf16 %v1151_v43, %v1151_v43  ;;  %v2336_v37 = vld [vmem:[#allocation11 + $0x4] ss:$8 sps:$4 sm:$0xff]   ;;  %v2337_v39 = vld [vmem:[#allocation12 + $0x78] sm:$0xff]  }
 0x6a9   : > { %2061 = vmatpush3.bf16.msra.mxu0 %v1046_v36  ;;  %2062 = vmatprep.mubr.msk.bf16.mxu0 %vm2683_vm2, %v2682_v26  ;;  %v2331_v36 = vld [vmem:[#allocation11 + $0x10] ss:$8 sps:$4 sm:$0xff]  }
 0x6aa   : > { %2072 = vmatprep.subr.bf16.mxu0 %v2682_v26  ;;  %1988 = vmatprep.subr.bf16.mxu1 %v2337_v39 }
 0x6b0   : > { %2063 = vmatmul.mubr.msk.bf16.vlgmr.msra.gmra.mxu0 %vm810_vm3, %v1044_v41 }
 0x6b1   : > { %2073 = vmatpush3.bf16.msra.mxu0 %v1154_v40  ;;  %2074 = vmatprep.mubr.msk.bf16.mxu0 %vm2683_vm2, %v2682_v26  ;;  %v2338_v40 = vld [vmem:[#allocation12 + $0x38] sm:$0xff]  }
 0x6b8   : > { %2075 = vmatmul.mubr.msk.bf16.vlgmr.msra.gmra.mxu0 %vm810_vm3, %v1152_v44 }
 0x6b9   : > { %1489 = vmatprep.mubr.bf16.mxu0 %v2687_v32 }
 0x768   : > { %v977_v52 = vpop.f32.mrf.mxu0 }
 0x769   : > { %1200 = vrot.lane.b32.xlu0 %v977_v52, %s2686_s12  ;;  %v2342_v52 = vld [vmem:[#allocation12 + $0x28] sm:$0xff]   ;;  %s2533_s12 = scalar_lea.vmem %s1701_s3, 128 }
 0x76a   : > { %v2052_v53 = vpop.f32.mrf.mxu0  ;;  %p2534_p4 = scmp.ne.s32.totalorder %s1701_s3, %s2533_s12  ;;  %p2541_p12 = scmp.lt.s32.totalorder %s2539_s22, %s2533_s12 }
 0x76b   : > { %v2343_v53 = vld [vmem:[#allocation12 + $0x60] sm:$0xff]  }
 0x76c   : > { %v980_v55 = vpop.f32.mrf.mxu0  ;;  %p2535_p10 = pnand %p2534_p4, %p2904_p7  ;;  %p2542_p13 = por %p2541_p12, %p2540_p9 }
 0x76d   : > { %v2345_v55 = vld [vmem:[#allocation12 + $0x58] sm:$0xff]  }
 0x76e   : > { %v2053_v56 = vpop.f32.mrf.mxu0  ;;  %p2536_p2 = pneg %p2535_p10 }
 0x76f   : > { %v2346_v56 = vld [vmem:[#allocation12 + $0x18] sm:$0xff]  }
 0x770   : > { %v1085_v57 = vpop.f32.mrf.mxu0  ;;  %p2543_p0 = pnand %p2542_p13, %p2536_p2 }
 0x771   : > { %1204 = vrot.lane.b32.xlu1 %v1085_v57, %s2685_s6  ;;  %v2349_v57 = vld [vmem:[#allocation12 + $0x48] sm:$0xff]  }
 0x772   : > { %v2064_v58 = vpop.f32.mrf.mxu0 }
 0x773   : > { %v2350_v58 = vld [vmem:[#allocation12 + $0x8] sm:$0xff]  }
 0x774   : > { %v1088_v60 = vpop.f32.mrf.mxu0 }
 0x775   : > { %v2351_v60 = vld [vmem:[#allocation12 + $0x40] sm:$0xff]  }
 0x776   : > { %v2065_v61 = vpop.f32.mrf.mxu0 }
 0x777   : > { %v2352_v61 = vld [vmem:[#allocation12] sm:$0xff]  }
 0x778   : > { %v1193_v62 = vpop.f32.mrf.mxu0 }
 0x779   : > { %1208 = vrot.lane.b32.xlu0 %v1193_v62, %s2684_s4  ;;  %v1367_v62 = vlaneseq  ;;  %s3206_s4 = sld [smem:[#allocation30_spill]] }
 0x77a   : > { %v2076_v63 = vpop.f32.mrf.mxu0 }
 0x77b   : > { %v1368_v63 = vshrl.u32 %v1367_v62, 7 }
 0x77c   : > { %v1196_v6 = vpop.f32.mrf.mxu0 }
 0x77d   : > { %v1369_v6 = vsub.s32 0, %v1368_v63 }
 0x77e   : > { %v2077_v7 = vpop.f32.mrf.mxu0 }
 0x77f   : > { %v1365_v7 = vld [vmem:[%s3204_s30] sm:$0x3]  ;;  %s1698_s6 = scalar_lea.hbm %s3206_s4, %s1945_s23 }
 0x7db   : > { %v1201_v0 = vpop.permute.xlu0 %1200 }
 0x7dc   : > { %v1211_v8 = vsel %vm763_vm1, %v3050_v59, %v1201_v0  ;;  %v2315_v59 = vld [vmem:[#allocation11 + $0x74] ss:$8 sps:$4 sm:$0xff]   ;;  %v1373_v0 = vsub.s32 1, %v1368_v63 }
 0x7dd   : > { %1457 = vmatprep.subr.bf16.mxu0 %v2315_v59 }
 0x7de   : > { %1458 = vmatpush1.bf16.msra.mxu0 %v2313_v19 }
 0x7df   : > { %1459 = vmatprep.subr.bf16.mxu0 %v2318_v20 }
 0x7e2   : > { %1460 = vmatpush1.bf16.msra.mxu0 %v2316_v21 }
 0x7e3   : > { %v1205_v26 = vpop.permute.xlu1 %1204  ;;  %1461 = vmatprep.subr.bf16.mxu0 %v2321_v25 }
 0x7e4   : > { %v1213_v9 = vsel %vm1212_vm4, %v1211_v8, %v1205_v26  ;;  %v1370_v26 = vrot.slane %v1365_v7, %v1369_v6  ;;  %v1374_v8 = vrot.slane %v1365_v7, %v1373_v0 }
 0x7e6   : > { %1462 = vmatpush1.bf16.msra.mxu0 %v2319_v27 }
 0x7e7   : > { %1463 = vmatprep.subr.bf16.mxu0 %v2324_v29 }
 0x7ea   : > { %1464 = vmatpush1.bf16.msra.mxu0 %v2322_v28 }
 0x7eb   : > { %v1209_v10 = vpop.permute.xlu0 %1208  ;;  %1465 = vmatprep.subr.bf16.mxu0 %v2327_v30 }
 0x7ec   : > { %v1215_v1 = vsel %vm1214_vm5, %v1213_v9, %v1209_v10 }
 0x7ed   : > { %v1216_v11 = vpack.c.bf16 %v1215_v1, %v1215_v1 }
 0x7ee   : > { %1466 = vmatpush1.bf16.msra.mxu0 %v2325_v31 }
 0x7ef   : > { %2095 = vmatmul.mubr.bf16.vlgmr.msra.gmra.mxu1 %v1216_v11  ;;  %1467 = vmatprep.subr.bf16.mxu0 %v2330_v33 }
 0x7f0   : > { %1989 = vmatpush3.bf16.msra.mxu1 %v2338_v40 }
 0x7f1   : > { %1990 = vmatprep.subr.bf16.mxu1 %v2339_v49 }
 0x7f2   : > { %1468 = vmatpush1.bf16.msra.mxu0 %v2328_v34 }
 0x7f3   : > { %1469 = vmatprep.subr.bf16.mxu0 %v2333_v35 }
 0x7f4   : > { %1991 = vmatpush3.bf16.msra.mxu1 %v2340_v50 }
 0x7f5   : > { %1992 = vmatprep.subr.bf16.mxu1 %v2341_v51 }
 0x7f6   : > { %1470 = vmatpush1.bf16.msra.mxu0 %v2331_v36 }
 0x7f7   : > { %1471 = vmatprep.subr.bf16.mxu0 %v2336_v37 }
 0x7f8   : > { %1993 = vmatpush3.bf16.msra.mxu1 %v2342_v52 }
 0x7f9   : > { %1994 = vmatprep.subr.bf16.mxu1 %v2343_v53 }
 0x7fa   : > { %1472 = vmatpush1.bf16.msra.mxu0 %v2334_v38 }
 0x7fc   : > { %1995 = vmatpush3.bf16.msra.mxu1 %v2344_v54 }
 0x7fd   : > { %1996 = vmatprep.subr.bf16.mxu1 %v2345_v55 }
 0x800   : > { %1997 = vmatpush3.bf16.msra.mxu1 %v2346_v56 }
 0x8af   : > { %v1319_v13 = vpop.f32.mrf.mxu1 }
 0x8b0   : > { %v1320_v14 = vadd.f32 %v2971_v4, %v1319_v13 }
 0x8b1   : > { %v2096_v15 = vpop.f32.mrf.mxu1 }
 0x8b2   : > { %v3088_v16 = vadd.f32 %v1320_v14, %v747_v12 }
 0x8b3   : > { %v1322_v17 = vpop.f32.mrf.mxu1 }
 0x8b4   : > { %1326 = vadd.xlane.f32.xlu1 %v3088_v16 }
 0x8b5   : > { %v2097_v18 = vpop.f32.mrf.mxu1 }
 0x93d   : > { %v1327_v22 = vpop.xlane.xlu1 %1326 }
 0x93e   : > { %v1329_v23 = vmul.f32 0.0078125, %v1327_v22 }
 0x940   : > { %v1330_v24 = vsub.f32 %v3088_v16, %v1329_v23 }
 0x942   : > { %v1331_v4 = vmul.f32 %v1330_v24, %v1330_v24 }
 0x944   : > { %1332 = vadd.xlane.f32.xlu0 %v1331_v4 }
 0x9cd   : > { %v1333_v41 = vpop.xlane.xlu0 %1332 }
 0x9ce   : > { %v1334_v42 = vmul.f32 0.0078125, %v1333_v41 }
 0x9d0   : > { %v1335_v43 = vadd.f32 1e-05, %v1334_v42 }
 0x9d2   : > { %2369 = vrsqrt.f32 %v1335_v43 }
 0x9df   : > { %v2370_v44 = vpop.eup %2369 }
 0x9e0   : > { %v1337_v45 = vmul.f32 %v2370_v44, %v1330_v24 }
 0x9e2   : > { %v1342_v46 = vmul.f32 %v2967_v2, %v1337_v45  ;;  %v2347_v2 = vld [vmem:[#allocation12 + $0x50] sm:$0xff]  }
 0x9e3   : > { %1998 = vmatprep.subr.bf16.mxu1 %v2347_v2 }
 0x9e4   : > { %v1347_v47 = vadd.f32 %v2969_v3, %v1342_v46  ;;  %v2348_v3 = vld [vmem:[#allocation12 + $0x10] sm:$0xff]  }
 0x9e5   : > { %1999 = vmatpush3.bf16.msra.mxu1 %v2348_v3 }
 0x9e6   : > { %v1348_v48 = vpack.c.bf16 %v1347_v47, %v1347_v47  ;;  %2000 = vmatprep.subr.bf16.mxu1 %v2349_v57 }
 0x9e8   : > { %1490 = vmatmul.mubr.bf16.vlgmr.msra.gmra.mxu0 %v1348_v48 }
 0x9e9   : > { %2001 = vmatpush3.bf16.msra.mxu1 %v2350_v58 }
 0x9ea   : > { %2002 = vmatprep.subr.bf16.mxu1 %v2351_v60 }
 0x9ed   : > { %2003 = vmatpush3.bf16.msra.mxu1 %v2352_v61 }
 0xaa8   : > { %v1491_v9 = vpop.f32.mrf.mxu0 }
 0xaa9   : > { %v1492_v10 = vadd.f32 %v1491_v9, %v1370_v26 }
 0xaaa   : > { %v1493_v1 = vpop.f32.mrf.mxu0 }
 0xaab   : > { %v1500_v11 = vmul.f32 0.70710677, %v1492_v10  ;;  %v1494_v12 = vadd.f32 %v1493_v1, %v1374_v8  ;;  %v1498_v59 = vmul.f32 0.5, %v1492_v10 }
 0xaac   : > { %v1495_v13 = vpop.f32.mrf.mxu0 }
 0xaad   : > { %2371 = verf.f32 %v1500_v11  ;;  %v1501_v14 = vmul.f32 0.70710677, %v1494_v12  ;;  %v1499_v20 = vmul.f32 0.5, %v1494_v12 }
 0xaae   : > { %v1496_v15 = vpop.f32.mrf.mxu0 }
 0xaaf   : > { %2373 = verf.f32 %v1501_v14 }
 0xaba   : > { %v2372_v17 = vpop.eup %2371 }
 0xabb   : > { %v1504_v18 = vadd.f32 1.0, %v2372_v17 }
 0xabc   : > { %v2374_v19 = vpop.eup %2373 }
 0xabd   : > { %v1505_v21 = vadd.f32 1.0, %v2374_v19  ;;  %v1506_v22 = vmul.f32 %v1504_v18, %v1498_v59 }
 0xabf   : > { %v1507_v23 = vmul.f32 %v1505_v21, %v1499_v20  ;;  %v1508_v4 = vpack.c.bf16 %v1506_v22, %v1506_v22 }
 0xac1   : > { %v1509_v24 = vpack.c.bf16 %v1507_v23, %v1507_v23 }
 0xac3   : > { %1674 = vmatprep.mubr.bf16.mxu1 %v1509_v24 }
 0xac4   : > { %1675 = vmatmul.mubr.bf16.vlgmr.msra.gmra.mxu1 %v1508_v4 }
 0xb84   : > { %v2004_v25 = vpop.f32.mrf.mxu1 }
 0xb86   : > { %v2005_v27 = vpop.f32.mrf.mxu1 }
 0xb87   : > { %v2006_v28 = vadd.f32 %v2005_v27, %v2004_v25 }
 0xb88   : > { %v2007_v29 = vpop.f32.mrf.mxu1 }
 0xb89   : > { %v1677_v30 = vadd.f32 %v2006_v28, %v2973_v5 }
 0xb8a   : > { %v2008_v31 = vpop.f32.mrf.mxu1 }
 0xb8b   : > { %v1682_v32 = vadd.f32 %v1677_v30, %v3088_v16 }
 0xb8d   : > { %1683 = vst [vmem:[%s408_s17] sm:$0xff] %v1682_v32 }
 0xb8e   : > { %2546 = shalt.err (!%p2543_p0)
}
 0xb8f   : > { %s2547_s30 = scalar_lea.hbm %s1698_s6, 128  ;;  %s2551_s17 = scalar_lea.hbm %s3206_s4, 512 }
 0xb90   : > { %p2548_p3 = scmp.ne.s32.totalorder %s1698_s6, %s2547_s30  ;;  %p2552_p8 = scmp.lt.s32.totalorder %s1698_s6, %s3206_s4 }
 0xb91   : > { %p2553_p1 = scmp.lt.s32.totalorder %s2551_s17, %s2547_s30 }
 0xb92   : > { %p2549_p11 = pnand %p2548_p3, %p2904_p7 }
 0xb93   : > { %p2554_p4 = por %p2553_p1, %p2552_p8 }
 0xb94   : > { %p2550_p5 = pneg %p2549_p11 }
 0xb96   : > { %p2555_p10 = pnand %p2554_p4, %p2550_p5 }
 0xb98   : > { %2558 = shalt.err (!%p2555_p10)
}
 0xb99   : > { %2120 = dma.vmem_to_hbm [thread:$0]  (%p2904_p7), %s1701_s3, 128, %s1698_s6, %s1685_s11  }
 0xb9a PF: > { %p2157_p2 = scmp.ge.s32.totalorder %s2665_s15, 2  ;;  %s1712_s18 = sand.u32 1, %s2625_s27  }
 0xb9b   : > { %s1713_s23 = scalar_lea.sflag [#allocation5], %s1712_s18 }
 0xb9c   : > { %p2143_p9 = pnand %p2157_p2, %p2917_p6 }
 0xb9e   : > { %p2144_p12 = pneg %p2143_p9 }
 0xba0   : > { %2620 = dma.done.wait (%p2144_p12), %s1713_s23, 128  }
 0xba1   : > { %2622 = vsyncadd (%p2144_p12), %s1713_s23, 4294967168  ;;  %s27_s15 = sadd.s32 1, %s2665_s15   ;;  %s3207_s25 = sld [smem:[#allocation21_spill]] }
 0xba2   : > { %p24_p13 = scmp.ge.s32.totalorder %s27_s15, 6   ;;  %s3208_s3 = sld [smem:[#allocation22_spill]] }
 0xba3   : > { %s3209_s27 = smov %s2629_s28  ;;  %s3210_s28 = smov %s2633_s29 }
 0xba4   : > { %s3211_s29 = smov %s2912_s1  ;;  %s3212_s30 = smov %s2641_s9 }
 0xba5   : > { %s3213_s9 = smov %s2645_s10  ;;  %s3214_s10 = smov %s2909_s21 }
 0xba6   : > { %s3215_s11 = smov %s2657_s13  ;;  %s3216_s12 = smov %s2661_s14 }
 0xba7   : > { %s3217_s13 = smov %s3207_s25  ;;  %26 = sbr.rel (!%p24_p13) target bundleno = 21 (0x15), region = 123 }
 0xba8   : > { %s3218_s14 = smov %s3208_s3 }
 0xbac   :  { %1718 = vsyncpa [#allocation4], 1 }
 0xbad   :  { %1720 = vsyncpa [#allocation4 + $0x1], 1 }
 0xbae   :  { %1721 = vsyncpa [#allocation7], 1 }
 0xbaf   :  { %1722 = vsyncpa [#allocation10], 1 }
 0xbb0   :  { %1723 = vsyncpa [#allocation13], 1 }
 0xbb1   :  { %1724 = vsyncpa [#allocation5], 1 }
 0xbb2   :  { %1726 = vsyncpa [#allocation5 + $0x1], 1 }

</bundles_post_ra>
